<compile_context>
chip_gen: v7x
topology: tpu7x:2x2x1
jax: 0.10.0
libtpu: 0.0.40
codegen_flags: <defaults>
</compile_context>

<pallas_src>
import jax
import jax.numpy as jnp
from jax.experimental import pallas as pl
from jax.experimental.pallas import tpu as pltpu

H = 10               # true hidden width of both hidden layers
LANES = 128          # TPU lane width; batch is laid out lane-dense
MAX_TILE_ROWS = 64   # 64 rows x 128 lanes = 8192 batch elements / grid step


def _cdiv(a, b):
    return (a + b - 1) // b


def _round_up(n, m):
    return ((n + m - 1) // m) * m


def _mlp_kernel(x_ref, w1_ref, b1_ref, w2_ref, b2_ref, w3_ref, b3_ref, o_ref):
    """Batch tile is (tile_rows, 128), batch mapped to (row, lane).
    All layers are unrolled scalar-broadcast ops: VPU mul/add + EUP tanh/sigmoid.
    No MXU, no lane padding of the hidden dim, no cross-lane reductions."""
    x = x_ref[...]                                              # (TR, 128) f32
    # layer 1: Linear(1, 10) + tanh  (10 broadcast FMAs + 10 EUP tanh)
    h1 = [jnp.tanh(x * w1_ref[j] + b1_ref[j]) for j in range(H)]
    # layer 2: Linear(10, 10) + sigmoid  (100 broadcast FMAs + 10 EUP sigmoid)
    h2 = []
    for k in range(H):
        acc = h1[0] * w2_ref[0, k] + b2_ref[k]
        for j in range(1, H):
            acc = acc + h1[j] * w2_ref[j, k]
        h2.append(jax.nn.sigmoid(acc))
    # output layer: Linear(10, 1)  (10 broadcast FMAs)
    o = h2[0] * w3_ref[0] + b3_ref[0]
    for k in range(1, H):
        o = o + h2[k] * w3_ref[k]
    o_ref[...] = o.astype(o_ref.dtype)                          # (TR, 128)


def prep_params(params):
    """Flatten parameters to the tiny SMEM-resident arrays the kernel reads.
    Incoming weights are stored (in_features, out_features). No padding needed."""
    w1, b1, w2, b2, w3, b3 = params
    return (w1.reshape(H).astype(jnp.float32),      # (10,)   Linear(1,10) weight
            b1.astype(jnp.float32),                 # (10,)
            w2.astype(jnp.float32),                 # (10,10) [in, out]
            b2.astype(jnp.float32),                 # (10,)
            w3.reshape(H).astype(jnp.float32),      # (10,)   Linear(10,1) weight
            b3.reshape(1).astype(jnp.float32))      # (1,)


@jax.jit
def mlp_forward(x, smem_params):
    """x: (B, 1) float32 -> (B, 1) float32, matching Net.forward."""
    w1, b1, w2, b2, w3, b3 = smem_params
    B = x.shape[0]

    n_rows = _cdiv(B, LANES)
    n_steps = _cdiv(n_rows, MAX_TILE_ROWS)
    if n_steps == 1:
        # single grid step: block == full array, no 8-row divisibility needed
        tile_rows = n_rows
    else:
        # balanced tiles (avoid a nearly-empty tail), sublane multiple of 8
        tile_rows = _round_up(_cdiv(n_rows, n_steps), 8)
    rows_p = tile_rows * n_steps
    Bp = rows_p * LANES

    xf = x.reshape(-1).astype(jnp.float32)          # (B,) -- free reshape
    if Bp != B:
        xf = jnp.pad(xf, (0, Bp - B))               # only for non-128-aligned batches
    x2 = xf.reshape(rows_p, LANES)                  # lane-dense slab: batch -> (row, lane)

    smem = pl.BlockSpec(memory_space=pltpu.MemorySpace.SMEM)
    out2 = pl.pallas_call(
        _mlp_kernel,
        out_shape=jax.ShapeDtypeStruct((rows_p, LANES), jnp.float32),
        grid_spec=pltpu.PrefetchScalarGridSpec(
            num_scalar_prefetch=0,
            grid=(n_steps,),
            in_specs=[
                pl.BlockSpec((tile_rows, LANES), lambda i: (i, 0)),  # x tile, lane-dense
                smem, smem, smem, smem, smem, smem,                  # params as SMEM scalars
            ],
            out_specs=pl.BlockSpec((tile_rows, LANES), lambda i: (i, 0)),
        ),
        compiler_params=pltpu.CompilerParams(
            # batch axis is parallel: shards across the 2 TensorCores on v7x
            # whenever the batch spans >= 2 tiles (> 8192 rows).
            dimension_semantics=("parallel",)),
    )(x2, w1, b1, w2, b2, w3, b3)

    out = out2.reshape(Bp, 1)
    return out[:B, :] if Bp != B else out


def init_params(key):
    """Deterministic init mimicking torch.nn.Linear defaults:
    U(-1/sqrt(fan_in), 1/sqrt(fan_in)); weights stored (in_features, out_features)."""
    def linear(k, fan_in, fan_out):
        kw, kb = jax.random.split(k)
        bound = 1.0 / jnp.sqrt(jnp.float32(fan_in))
        w = jax.random.uniform(kw, (fan_in, fan_out), jnp.float32, -bound, bound)
        b = jax.random.uniform(kb, (fan_out,), jnp.float32, -bound, bound)
        return w, b

    k1, k2, k3 = jax.random.split(key, 3)
    w1, b1 = linear(k1, 1, H)
    w2, b2 = linear(k2, H, H)
    w3, b3 = linear(k3, H, 1)
    return (w1, b1, w2, b2, w3, b3)


def reference_forward(x, params):
    """Pure-JAX reference of Net.forward for verification."""
    w1, b1, w2, b2, w3, b3 = params
    h = jnp.tanh(x @ w1 + b1)
    h = jax.nn.sigmoid(h @ w2 + b2)
    return h @ w3 + b3


if __name__ == "__main__":
    key = jax.random.PRNGKey(0)
    kp, kx1, kx2, kx3 = jax.random.split(key, 4)
    params = init_params(kp)
    smem_params = prep_params(params)

    # small batch (single grid step, block == full array)
    x_small = jax.random.normal(kx1, (8, 1), jnp.float32)
    out_small = jax.block_until_ready(mlp_forward(x_small, smem_params))
    ref_small = reference_forward(x_small, params)
    assert out_small.shape == (8, 1), out_small.shape
    assert jnp.allclose(out_small, ref_small, atol=1e-5, rtol=1e-5)

    # non-128-aligned batch (exercises wrapper pad/slice path)
    x_mid = jax.random.normal(kx2, (1000, 1), jnp.float32)
    out_mid = jax.block_until_ready(mlp_forward(x_mid, smem_params))
    ref_mid = reference_forward(x_mid, params)
    assert out_mid.shape == (1000, 1), out_mid.shape
    assert jnp.allclose(out_mid, ref_mid, atol=1e-5, rtol=1e-5)

    # batch large enough to span >= 2 grid steps (balanced tiles, parallel axis)
    x_big = jax.random.normal(kx3, (9000, 1), jnp.float32)
    out_big = jax.block_until_ready(mlp_forward(x_big, smem_params))
    ref_big = reference_forward(x_big, params)
    assert out_big.shape == (9000, 1), out_big.shape
    assert jnp.allclose(out_big, ref_big, atol=1e-5, rtol=1e-5)

    print("KERNEL_OK")
</pallas_src>

<mosaic_0001>
module attributes {stable_mosaic.version = 11 : i64} {
  func.func @_mlp_kernel(%arg0: i32, %arg1: memref<1x128xf32, #tpu.memory_space<vmem>>, %arg2: memref<10xf32, #tpu.memory_space<smem>>, %arg3: memref<10xf32, #tpu.memory_space<smem>>, %arg4: memref<10x10xf32, #tpu.memory_space<smem>>, %arg5: memref<10xf32, #tpu.memory_space<smem>>, %arg6: memref<10xf32, #tpu.memory_space<smem>>, %arg7: memref<1xf32, #tpu.memory_space<smem>>, %arg8: memref<1x128xf32, #tpu.memory_space<vmem>>) attributes {dimension_semantics = [#tpu.dimension_semantics<parallel>], iteration_bounds = array<i64: 1>, scalar_prefetch = 0 : i64, scratch_operands = 0 : i64, tpu.core_type = #tpu.core_type<tc>, window_params = [{transform_indices = @transform_0, window_bounds = array<i64: 1, 128>}, {transform_indices = @transform_1, window_bounds = array<i64: 10>}, {transform_indices = @transform_2, window_bounds = array<i64: 10>}, {transform_indices = @transform_3, window_bounds = array<i64: 10, 10>}, {transform_indices = @transform_4, window_bounds = array<i64: 10>}, {transform_indices = @transform_5, window_bounds = array<i64: 10>}, {transform_indices = @transform_6, window_bounds = array<i64: 1>}, {transform_indices = @transform_7, window_bounds = array<i64: 1, 128>}]} {
    %c0 = arith.constant 0 : index
    %c0_0 = arith.constant 0 : index
    %0 = vector.load %arg1[%c0, %c0_0] : memref<1x128xf32, #tpu.memory_space<vmem>>, vector<1x128xf32>
    %c0_1 = arith.constant 0 : index
    %1 = memref.load %arg2[%c0_1] : memref<10xf32, #tpu.memory_space<smem>>
    %2 = vector.broadcast %1 : f32 to vector<1x128xf32>
    %3 = arith.mulf %0, %2 : vector<1x128xf32>
    %c0_2 = arith.constant 0 : index
    %4 = memref.load %arg3[%c0_2] : memref<10xf32, #tpu.memory_space<smem>>
    %5 = vector.broadcast %4 : f32 to vector<1x128xf32>
    %6 = arith.addf %3, %5 : vector<1x128xf32>
    %7 = math.tanh %6 : vector<1x128xf32>
    %c1 = arith.constant 1 : index
    %8 = memref.load %arg2[%c1] : memref<10xf32, #tpu.memory_space<smem>>
    %9 = vector.broadcast %8 : f32 to vector<1x128xf32>
    %10 = arith.mulf %0, %9 : vector<1x128xf32>
    %c1_3 = arith.constant 1 : index
    %11 = memref.load %arg3[%c1_3] : memref<10xf32, #tpu.memory_space<smem>>
    %12 = vector.broadcast %11 : f32 to vector<1x128xf32>
    %13 = arith.addf %10, %12 : vector<1x128xf32>
    %14 = math.tanh %13 : vector<1x128xf32>
    %c2 = arith.constant 2 : index
    %15 = memref.load %arg2[%c2] : memref<10xf32, #tpu.memory_space<smem>>
    %16 = vector.broadcast %15 : f32 to vector<1x128xf32>
    %17 = arith.mulf %0, %16 : vector<1x128xf32>
    %c2_4 = arith.constant 2 : index
    %18 = memref.load %arg3[%c2_4] : memref<10xf32, #tpu.memory_space<smem>>
    %19 = vector.broadcast %18 : f32 to vector<1x128xf32>
    %20 = arith.addf %17, %19 : vector<1x128xf32>
    %21 = math.tanh %20 : vector<1x128xf32>
    %c3 = arith.constant 3 : index
    %22 = memref.load %arg2[%c3] : memref<10xf32, #tpu.memory_space<smem>>
    %23 = vector.broadcast %22 : f32 to vector<1x128xf32>
    %24 = arith.mulf %0, %23 : vector<1x128xf32>
    %c3_5 = arith.constant 3 : index
    %25 = memref.load %arg3[%c3_5] : memref<10xf32, #tpu.memory_space<smem>>
    %26 = vector.broadcast %25 : f32 to vector<1x128xf32>
    %27 = arith.addf %24, %26 : vector<1x128xf32>
    %28 = math.tanh %27 : vector<1x128xf32>
    %c4 = arith.constant 4 : index
    %29 = memref.load %arg2[%c4] : memref<10xf32, #tpu.memory_space<smem>>
    %30 = vector.broadcast %29 : f32 to vector<1x128xf32>
    %31 = arith.mulf %0, %30 : vector<1x128xf32>
    %c4_6 = arith.constant 4 : index
    %32 = memref.load %arg3[%c4_6] : memref<10xf32, #tpu.memory_space<smem>>
    %33 = vector.broadcast %32 : f32 to vector<1x128xf32>
    %34 = arith.addf %31, %33 : vector<1x128xf32>
    %35 = math.tanh %34 : vector<1x128xf32>
    %c5 = arith.constant 5 : index
    %36 = memref.load %arg2[%c5] : memref<10xf32, #tpu.memory_space<smem>>
    %37 = vector.broadcast %36 : f32 to vector<1x128xf32>
    %38 = arith.mulf %0, %37 : vector<1x128xf32>
    %c5_7 = arith.constant 5 : index
    %39 = memref.load %arg3[%c5_7] : memref<10xf32, #tpu.memory_space<smem>>
    %40 = vector.broadcast %39 : f32 to vector<1x128xf32>
    %41 = arith.addf %38, %40 : vector<1x128xf32>
    %42 = math.tanh %41 : vector<1x128xf32>
    %c6 = arith.constant 6 : index
    %43 = memref.load %arg2[%c6] : memref<10xf32, #tpu.memory_space<smem>>
    %44 = vector.broadcast %43 : f32 to vector<1x128xf32>
    %45 = arith.mulf %0, %44 : vector<1x128xf32>
    %c6_8 = arith.constant 6 : index
    %46 = memref.load %arg3[%c6_8] : memref<10xf32, #tpu.memory_space<smem>>
    %47 = vector.broadcast %46 : f32 to vector<1x128xf32>
    %48 = arith.addf %45, %47 : vector<1x128xf32>
    %49 = math.tanh %48 : vector<1x128xf32>
    %c7 = arith.constant 7 : index
    %50 = memref.load %arg2[%c7] : memref<10xf32, #tpu.memory_space<smem>>
    %51 = vector.broadcast %50 : f32 to vector<1x128xf32>
    %52 = arith.mulf %0, %51 : vector<1x128xf32>
    %c7_9 = arith.constant 7 : index
    %53 = memref.load %arg3[%c7_9] : memref<10xf32, #tpu.memory_space<smem>>
    %54 = vector.broadcast %53 : f32 to vector<1x128xf32>
    %55 = arith.addf %52, %54 : vector<1x128xf32>
    %56 = math.tanh %55 : vector<1x128xf32>
    %c8 = arith.constant 8 : index
    %57 = memref.load %arg2[%c8] : memref<10xf32, #tpu.memory_space<smem>>
    %58 = vector.broadcast %57 : f32 to vector<1x128xf32>
    %59 = arith.mulf %0, %58 : vector<1x128xf32>
    %c8_10 = arith.constant 8 : index
    %60 = memref.load %arg3[%c8_10] : memref<10xf32, #tpu.memory_space<smem>>
    %61 = vector.broadcast %60 : f32 to vector<1x128xf32>
    %62 = arith.addf %59, %61 : vector<1x128xf32>
    %63 = math.tanh %62 : vector<1x128xf32>
    %c9 = arith.constant 9 : index
    %64 = memref.load %arg2[%c9] : memref<10xf32, #tpu.memory_space<smem>>
    %65 = vector.broadcast %64 : f32 to vector<1x128xf32>
    %66 = arith.mulf %0, %65 : vector<1x128xf32>
    %c9_11 = arith.constant 9 : index
    %67 = memref.load %arg3[%c9_11] : memref<10xf32, #tpu.memory_space<smem>>
    %68 = vector.broadcast %67 : f32 to vector<1x128xf32>
    %69 = arith.addf %66, %68 : vector<1x128xf32>
    %70 = math.tanh %69 : vector<1x128xf32>
    %c0_12 = arith.constant 0 : index
    %c0_13 = arith.constant 0 : index
    %71 = memref.load %arg4[%c0_12, %c0_13] : memref<10x10xf32, #tpu.memory_space<smem>>
    %72 = vector.broadcast %71 : f32 to vector<1x128xf32>
    %73 = arith.mulf %7, %72 : vector<1x128xf32>
    %c0_14 = arith.constant 0 : index
    %74 = memref.load %arg5[%c0_14] : memref<10xf32, #tpu.memory_space<smem>>
    %75 = vector.broadcast %74 : f32 to vector<1x128xf32>
    %76 = arith.addf %73, %75 : vector<1x128xf32>
    %c1_15 = arith.constant 1 : index
    %c0_16 = arith.constant 0 : index
    %77 = memref.load %arg4[%c1_15, %c0_16] : memref<10x10xf32, #tpu.memory_space<smem>>
    %78 = vector.broadcast %77 : f32 to vector<1x128xf32>
    %79 = arith.mulf %14, %78 : vector<1x128xf32>
    %80 = arith.addf %76, %79 : vector<1x128xf32>
    %c2_17 = arith.constant 2 : index
    %c0_18 = arith.constant 0 : index
    %81 = memref.load %arg4[%c2_17, %c0_18] : memref<10x10xf32, #tpu.memory_space<smem>>
    %82 = vector.broadcast %81 : f32 to vector<1x128xf32>
    %83 = arith.mulf %21, %82 : vector<1x128xf32>
    %84 = arith.addf %80, %83 : vector<1x128xf32>
    %c3_19 = arith.constant 3 : index
    %c0_20 = arith.constant 0 : index
    %85 = memref.load %arg4[%c3_19, %c0_20] : memref<10x10xf32, #tpu.memory_space<smem>>
    %86 = vector.broadcast %85 : f32 to vector<1x128xf32>
    %87 = arith.mulf %28, %86 : vector<1x128xf32>
    %88 = arith.addf %84, %87 : vector<1x128xf32>
    %c4_21 = arith.constant 4 : index
    %c0_22 = arith.constant 0 : index
    %89 = memref.load %arg4[%c4_21, %c0_22] : memref<10x10xf32, #tpu.memory_space<smem>>
    %90 = vector.broadcast %89 : f32 to vector<1x128xf32>
    %91 = arith.mulf %35, %90 : vector<1x128xf32>
    %92 = arith.addf %88, %91 : vector<1x128xf32>
    %c5_23 = arith.constant 5 : index
    %c0_24 = arith.constant 0 : index
    %93 = memref.load %arg4[%c5_23, %c0_24] : memref<10x10xf32, #tpu.memory_space<smem>>
    %94 = vector.broadcast %93 : f32 to vector<1x128xf32>
    %95 = arith.mulf %42, %94 : vector<1x128xf32>
    %96 = arith.addf %92, %95 : vector<1x128xf32>
    %c6_25 = arith.constant 6 : index
    %c0_26 = arith.constant 0 : index
    %97 = memref.load %arg4[%c6_25, %c0_26] : memref<10x10xf32, #tpu.memory_space<smem>>
    %98 = vector.broadcast %97 : f32 to vector<1x128xf32>
    %99 = arith.mulf %49, %98 : vector<1x128xf32>
    %100 = arith.addf %96, %99 : vector<1x128xf32>
    %c7_27 = arith.constant 7 : index
    %c0_28 = arith.constant 0 : index
    %101 = memref.load %arg4[%c7_27, %c0_28] : memref<10x10xf32, #tpu.memory_space<smem>>
    %102 = vector.broadcast %101 : f32 to vector<1x128xf32>
    %103 = arith.mulf %56, %102 : vector<1x128xf32>
    %104 = arith.addf %100, %103 : vector<1x128xf32>
    %c8_29 = arith.constant 8 : index
    %c0_30 = arith.constant 0 : index
    %105 = memref.load %arg4[%c8_29, %c0_30] : memref<10x10xf32, #tpu.memory_space<smem>>
    %106 = vector.broadcast %105 : f32 to vector<1x128xf32>
    %107 = arith.mulf %63, %106 : vector<1x128xf32>
    %108 = arith.addf %104, %107 : vector<1x128xf32>
    %c9_31 = arith.constant 9 : index
    %c0_32 = arith.constant 0 : index
    %109 = memref.load %arg4[%c9_31, %c0_32] : memref<10x10xf32, #tpu.memory_space<smem>>
    %110 = vector.broadcast %109 : f32 to vector<1x128xf32>
    %111 = arith.mulf %70, %110 : vector<1x128xf32>
    %112 = arith.addf %108, %111 : vector<1x128xf32>
    %113 = arith.negf %112 : vector<1x128xf32>
    %114 = math.exp %113 : vector<1x128xf32>
    %cst = arith.constant 1.000000e+00 : f32
    %115 = vector.broadcast %cst : f32 to vector<1x128xf32>
    %116 = arith.addf %115, %114 : vector<1x128xf32>
    %117 = arith.divf %115, %116 : vector<1x128xf32>
    %c0_33 = arith.constant 0 : index
    %c1_34 = arith.constant 1 : index
    %118 = memref.load %arg4[%c0_33, %c1_34] : memref<10x10xf32, #tpu.memory_space<smem>>
    %119 = vector.broadcast %118 : f32 to vector<1x128xf32>
    %120 = arith.mulf %7, %119 : vector<1x128xf32>
    %c1_35 = arith.constant 1 : index
    %121 = memref.load %arg5[%c1_35] : memref<10xf32, #tpu.memory_space<smem>>
    %122 = vector.broadcast %121 : f32 to vector<1x128xf32>
    %123 = arith.addf %120, %122 : vector<1x128xf32>
    %c1_36 = arith.constant 1 : index
    %c1_37 = arith.constant 1 : index
    %124 = memref.load %arg4[%c1_36, %c1_37] : memref<10x10xf32, #tpu.memory_space<smem>>
    %125 = vector.broadcast %124 : f32 to vector<1x128xf32>
    %126 = arith.mulf %14, %125 : vector<1x128xf32>
    %127 = arith.addf %123, %126 : vector<1x128xf32>
    %c2_38 = arith.constant 2 : index
    %c1_39 = arith.constant 1 : index
    %128 = memref.load %arg4[%c2_38, %c1_39] : memref<10x10xf32, #tpu.memory_space<smem>>
    %129 = vector.broadcast %128 : f32 to vector<1x128xf32>
    %130 = arith.mulf %21, %129 : vector<1x128xf32>
    %131 = arith.addf %127, %130 : vector<1x128xf32>
    %c3_40 = arith.constant 3 : index
    %c1_41 = arith.constant 1 : index
    %132 = memref.load %arg4[%c3_40, %c1_41] : memref<10x10xf32, #tpu.memory_space<smem>>
    %133 = vector.broadcast %132 : f32 to vector<1x128xf32>
    %134 = arith.mulf %28, %133 : vector<1x128xf32>
    %135 = arith.addf %131, %134 : vector<1x128xf32>
    %c4_42 = arith.constant 4 : index
    %c1_43 = arith.constant 1 : index
    %136 = memref.load %arg4[%c4_42, %c1_43] : memref<10x10xf32, #tpu.memory_space<smem>>
    %137 = vector.broadcast %136 : f32 to vector<1x128xf32>
    %138 = arith.mulf %35, %137 : vector<1x128xf32>
    %139 = arith.addf %135, %138 : vector<1x128xf32>
    %c5_44 = arith.constant 5 : index
    %c1_45 = arith.constant 1 : index
    %140 = memref.load %arg4[%c5_44, %c1_45] : memref<10x10xf32, #tpu.memory_space<smem>>
    %141 = vector.broadcast %140 : f32 to vector<1x128xf32>
    %142 = arith.mulf %42, %141 : vector<1x128xf32>
    %143 = arith.addf %139, %142 : vector<1x128xf32>
    %c6_46 = arith.constant 6 : index
    %c1_47 = arith.constant 1 : index
    %144 = memref.load %arg4[%c6_46, %c1_47] : memref<10x10xf32, #tpu.memory_space<smem>>
    %145 = vector.broadcast %144 : f32 to vector<1x128xf32>
    %146 = arith.mulf %49, %145 : vector<1x128xf32>
    %147 = arith.addf %143, %146 : vector<1x128xf32>
    %c7_48 = arith.constant 7 : index
    %c1_49 = arith.constant 1 : index
    %148 = memref.load %arg4[%c7_48, %c1_49] : memref<10x10xf32, #tpu.memory_space<smem>>
    %149 = vector.broadcast %148 : f32 to vector<1x128xf32>
    %150 = arith.mulf %56, %149 : vector<1x128xf32>
    %151 = arith.addf %147, %150 : vector<1x128xf32>
    %c8_50 = arith.constant 8 : index
    %c1_51 = arith.constant 1 : index
    %152 = memref.load %arg4[%c8_50, %c1_51] : memref<10x10xf32, #tpu.memory_space<smem>>
    %153 = vector.broadcast %152 : f32 to vector<1x128xf32>
    %154 = arith.mulf %63, %153 : vector<1x128xf32>
    %155 = arith.addf %151, %154 : vector<1x128xf32>
    %c9_52 = arith.constant 9 : index
    %c1_53 = arith.constant 1 : index
    %156 = memref.load %arg4[%c9_52, %c1_53] : memref<10x10xf32, #tpu.memory_space<smem>>
    %157 = vector.broadcast %156 : f32 to vector<1x128xf32>
    %158 = arith.mulf %70, %157 : vector<1x128xf32>
    %159 = arith.addf %155, %158 : vector<1x128xf32>
    %160 = arith.negf %159 : vector<1x128xf32>
    %161 = math.exp %160 : vector<1x128xf32>
    %cst_54 = arith.constant 1.000000e+00 : f32
    %162 = vector.broadcast %cst_54 : f32 to vector<1x128xf32>
    %163 = arith.addf %162, %161 : vector<1x128xf32>
    %164 = arith.divf %162, %163 : vector<1x128xf32>
    %c0_55 = arith.constant 0 : index
    %c2_56 = arith.constant 2 : index
    %165 = memref.load %arg4[%c0_55, %c2_56] : memref<10x10xf32, #tpu.memory_space<smem>>
    %166 = vector.broadcast %165 : f32 to vector<1x128xf32>
    %167 = arith.mulf %7, %166 : vector<1x128xf32>
    %c2_57 = arith.constant 2 : index
    %168 = memref.load %arg5[%c2_57] : memref<10xf32, #tpu.memory_space<smem>>
    %169 = vector.broadcast %168 : f32 to vector<1x128xf32>
    %170 = arith.addf %167, %169 : vector<1x128xf32>
    %c1_58 = arith.constant 1 : index
    %c2_59 = arith.constant 2 : index
    %171 = memref.load %arg4[%c1_58, %c2_59] : memref<10x10xf32, #tpu.memory_space<smem>>
    %172 = vector.broadcast %171 : f32 to vector<1x128xf32>
    %173 = arith.mulf %14, %172 : vector<1x128xf32>
    %174 = arith.addf %170, %173 : vector<1x128xf32>
    %c2_60 = arith.constant 2 : index
    %c2_61 = arith.constant 2 : index
    %175 = memref.load %arg4[%c2_60, %c2_61] : memref<10x10xf32, #tpu.memory_space<smem>>
    %176 = vector.broadcast %175 : f32 to vector<1x128xf32>
    %177 = arith.mulf %21, %176 : vector<1x128xf32>
    %178 = arith.addf %174, %177 : vector<1x128xf32>
    %c3_62 = arith.constant 3 : index
    %c2_63 = arith.constant 2 : index
    %179 = memref.load %arg4[%c3_62, %c2_63] : memref<10x10xf32, #tpu.memory_space<smem>>
    %180 = vector.broadcast %179 : f32 to vector<1x128xf32>
    %181 = arith.mulf %28, %180 : vector<1x128xf32>
    %182 = arith.addf %178, %181 : vector<1x128xf32>
    %c4_64 = arith.constant 4 : index
    %c2_65 = arith.constant 2 : index
    %183 = memref.load %arg4[%c4_64, %c2_65] : memref<10x10xf32, #tpu.memory_space<smem>>
    %184 = vector.broadcast %183 : f32 to vector<1x128xf32>
    %185 = arith.mulf %35, %184 : vector<1x128xf32>
    %186 = arith.addf %182, %185 : vector<1x128xf32>
    %c5_66 = arith.constant 5 : index
    %c2_67 = arith.constant 2 : index
    %187 = memref.load %arg4[%c5_66, %c2_67] : memref<10x10xf32, #tpu.memory_space<smem>>
    %188 = vector.broadcast %187 : f32 to vector<1x128xf32>
    %189 = arith.mulf %42, %188 : vector<1x128xf32>
    %190 = arith.addf %186, %189 : vector<1x128xf32>
    %c6_68 = arith.constant 6 : index
    %c2_69 = arith.constant 2 : index
    %191 = memref.load %arg4[%c6_68, %c2_69] : memref<10x10xf32, #tpu.memory_space<smem>>
    %192 = vector.broadcast %191 : f32 to vector<1x128xf32>
    %193 = arith.mulf %49, %192 : vector<1x128xf32>
    %194 = arith.addf %190, %193 : vector<1x128xf32>
    %c7_70 = arith.constant 7 : index
    %c2_71 = arith.constant 2 : index
    %195 = memref.load %arg4[%c7_70, %c2_71] : memref<10x10xf32, #tpu.memory_space<smem>>
    %196 = vector.broadcast %195 : f32 to vector<1x128xf32>
    %197 = arith.mulf %56, %196 : vector<1x128xf32>
    %198 = arith.addf %194, %197 : vector<1x128xf32>
    %c8_72 = arith.constant 8 : index
    %c2_73 = arith.constant 2 : index
    %199 = memref.load %arg4[%c8_72, %c2_73] : memref<10x10xf32, #tpu.memory_space<smem>>
    %200 = vector.broadcast %199 : f32 to vector<1x128xf32>
    %201 = arith.mulf %63, %200 : vector<1x128xf32>
    %202 = arith.addf %198, %201 : vector<1x128xf32>
    %c9_74 = arith.constant 9 : index
    %c2_75 = arith.constant 2 : index
    %203 = memref.load %arg4[%c9_74, %c2_75] : memref<10x10xf32, #tpu.memory_space<smem>>
    %204 = vector.broadcast %203 : f32 to vector<1x128xf32>
    %205 = arith.mulf %70, %204 : vector<1x128xf32>
    %206 = arith.addf %202, %205 : vector<1x128xf32>
    %207 = arith.negf %206 : vector<1x128xf32>
    %208 = math.exp %207 : vector<1x128xf32>
    %cst_76 = arith.constant 1.000000e+00 : f32
    %209 = vector.broadcast %cst_76 : f32 to vector<1x128xf32>
    %210 = arith.addf %209, %208 : vector<1x128xf32>
    %211 = arith.divf %209, %210 : vector<1x128xf32>
    %c0_77 = arith.constant 0 : index
    %c3_78 = arith.constant 3 : index
    %212 = memref.load %arg4[%c0_77, %c3_78] : memref<10x10xf32, #tpu.memory_space<smem>>
    %213 = vector.broadcast %212 : f32 to vector<1x128xf32>
    %214 = arith.mulf %7, %213 : vector<1x128xf32>
    %c3_79 = arith.constant 3 : index
    %215 = memref.load %arg5[%c3_79] : memref<10xf32, #tpu.memory_space<smem>>
    %216 = vector.broadcast %215 : f32 to vector<1x128xf32>
    %217 = arith.addf %214, %216 : vector<1x128xf32>
    %c1_80 = arith.constant 1 : index
    %c3_81 = arith.constant 3 : index
    %218 = memref.load %arg4[%c1_80, %c3_81] : memref<10x10xf32, #tpu.memory_space<smem>>
    %219 = vector.broadcast %218 : f32 to vector<1x128xf32>
    %220 = arith.mulf %14, %219 : vector<1x128xf32>
    %221 = arith.addf %217, %220 : vector<1x128xf32>
    %c2_82 = arith.constant 2 : index
    %c3_83 = arith.constant 3 : index
    %222 = memref.load %arg4[%c2_82, %c3_83] : memref<10x10xf32, #tpu.memory_space<smem>>
    %223 = vector.broadcast %222 : f32 to vector<1x128xf32>
    %224 = arith.mulf %21, %223 : vector<1x128xf32>
    %225 = arith.addf %221, %224 : vector<1x128xf32>
    %c3_84 = arith.constant 3 : index
    %c3_85 = arith.constant 3 : index
    %226 = memref.load %arg4[%c3_84, %c3_85] : memref<10x10xf32, #tpu.memory_space<smem>>
    %227 = vector.broadcast %226 : f32 to vector<1x128xf32>
    %228 = arith.mulf %28, %227 : vector<1x128xf32>
    %229 = arith.addf %225, %228 : vector<1x128xf32>
    %c4_86 = arith.constant 4 : index
    %c3_87 = arith.constant 3 : index
    %230 = memref.load %arg4[%c4_86, %c3_87] : memref<10x10xf32, #tpu.memory_space<smem>>
    %231 = vector.broadcast %230 : f32 to vector<1x128xf32>
    %232 = arith.mulf %35, %231 : vector<1x128xf32>
    %233 = arith.addf %229, %232 : vector<1x128xf32>
    %c5_88 = arith.constant 5 : index
    %c3_89 = arith.constant 3 : index
    %234 = memref.load %arg4[%c5_88, %c3_89] : memref<10x10xf32, #tpu.memory_space<smem>>
    %235 = vector.broadcast %234 : f32 to vector<1x128xf32>
    %236 = arith.mulf %42, %235 : vector<1x128xf32>
    %237 = arith.addf %233, %236 : vector<1x128xf32>
    %c6_90 = arith.constant 6 : index
    %c3_91 = arith.constant 3 : index
    %238 = memref.load %arg4[%c6_90, %c3_91] : memref<10x10xf32, #tpu.memory_space<smem>>
    %239 = vector.broadcast %238 : f32 to vector<1x128xf32>
    %240 = arith.mulf %49, %239 : vector<1x128xf32>
    %241 = arith.addf %237, %240 : vector<1x128xf32>
    %c7_92 = arith.constant 7 : index
    %c3_93 = arith.constant 3 : index
    %242 = memref.load %arg4[%c7_92, %c3_93] : memref<10x10xf32, #tpu.memory_space<smem>>
    %243 = vector.broadcast %242 : f32 to vector<1x128xf32>
    %244 = arith.mulf %56, %243 : vector<1x128xf32>
    %245 = arith.addf %241, %244 : vector<1x128xf32>
    %c8_94 = arith.constant 8 : index
    %c3_95 = arith.constant 3 : index
    %246 = memref.load %arg4[%c8_94, %c3_95] : memref<10x10xf32, #tpu.memory_space<smem>>
    %247 = vector.broadcast %246 : f32 to vector<1x128xf32>
    %248 = arith.mulf %63, %247 : vector<1x128xf32>
    %249 = arith.addf %245, %248 : vector<1x128xf32>
    %c9_96 = arith.constant 9 : index
    %c3_97 = arith.constant 3 : index
    %250 = memref.load %arg4[%c9_96, %c3_97] : memref<10x10xf32, #tpu.memory_space<smem>>
    %251 = vector.broadcast %250 : f32 to vector<1x128xf32>
    %252 = arith.mulf %70, %251 : vector<1x128xf32>
    %253 = arith.addf %249, %252 : vector<1x128xf32>
    %254 = arith.negf %253 : vector<1x128xf32>
    %255 = math.exp %254 : vector<1x128xf32>
    %cst_98 = arith.constant 1.000000e+00 : f32
    %256 = vector.broadcast %cst_98 : f32 to vector<1x128xf32>
    %257 = arith.addf %256, %255 : vector<1x128xf32>
    %258 = arith.divf %256, %257 : vector<1x128xf32>
    %c0_99 = arith.constant 0 : index
    %c4_100 = arith.constant 4 : index
    %259 = memref.load %arg4[%c0_99, %c4_100] : memref<10x10xf32, #tpu.memory_space<smem>>
    %260 = vector.broadcast %259 : f32 to vector<1x128xf32>
    %261 = arith.mulf %7, %260 : vector<1x128xf32>
    %c4_101 = arith.constant 4 : index
    %262 = memref.load %arg5[%c4_101] : memref<10xf32, #tpu.memory_space<smem>>
    %263 = vector.broadcast %262 : f32 to vector<1x128xf32>
    %264 = arith.addf %261, %263 : vector<1x128xf32>
    %c1_102 = arith.constant 1 : index
    %c4_103 = arith.constant 4 : index
    %265 = memref.load %arg4[%c1_102, %c4_103] : memref<10x10xf32, #tpu.memory_space<smem>>
    %266 = vector.broadcast %265 : f32 to vector<1x128xf32>
    %267 = arith.mulf %14, %266 : vector<1x128xf32>
    %268 = arith.addf %264, %267 : vector<1x128xf32>
    %c2_104 = arith.constant 2 : index
    %c4_105 = arith.constant 4 : index
    %269 = memref.load %arg4[%c2_104, %c4_105] : memref<10x10xf32, #tpu.memory_space<smem>>
    %270 = vector.broadcast %269 : f32 to vector<1x128xf32>
    %271 = arith.mulf %21, %270 : vector<1x128xf32>
    %272 = arith.addf %268, %271 : vector<1x128xf32>
    %c3_106 = arith.constant 3 : index
    %c4_107 = arith.constant 4 : index
    %273 = memref.load %arg4[%c3_106, %c4_107] : memref<10x10xf32, #tpu.memory_space<smem>>
    %274 = vector.broadcast %273 : f32 to vector<1x128xf32>
    %275 = arith.mulf %28, %274 : vector<1x128xf32>
    %276 = arith.addf %272, %275 : vector<1x128xf32>
    %c4_108 = arith.constant 4 : index
    %c4_109 = arith.constant 4 : index
    %277 = memref.load %arg4[%c4_108, %c4_109] : memref<10x10xf32, #tpu.memory_space<smem>>
    %278 = vector.broadcast %277 : f32 to vector<1x128xf32>
    %279 = arith.mulf %35, %278 : vector<1x128xf32>
    %280 = arith.addf %276, %279 : vector<1x128xf32>
    %c5_110 = arith.constant 5 : index
    %c4_111 = arith.constant 4 : index
    %281 = memref.load %arg4[%c5_110, %c4_111] : memref<10x10xf32, #tpu.memory_space<smem>>
    %282 = vector.broadcast %281 : f32 to vector<1x128xf32>
    %283 = arith.mulf %42, %282 : vector<1x128xf32>
    %284 = arith.addf %280, %283 : vector<1x128xf32>
    %c6_112 = arith.constant 6 : index
    %c4_113 = arith.constant 4 : index
    %285 = memref.load %arg4[%c6_112, %c4_113] : memref<10x10xf32, #tpu.memory_space<smem>>
    %286 = vector.broadcast %285 : f32 to vector<1x128xf32>
    %287 = arith.mulf %49, %286 : vector<1x128xf32>
    %288 = arith.addf %284, %287 : vector<1x128xf32>
    %c7_114 = arith.constant 7 : index
    %c4_115 = arith.constant 4 : index
    %289 = memref.load %arg4[%c7_114, %c4_115] : memref<10x10xf32, #tpu.memory_space<smem>>
    %290 = vector.broadcast %289 : f32 to vector<1x128xf32>
    %291 = arith.mulf %56, %290 : vector<1x128xf32>
    %292 = arith.addf %288, %291 : vector<1x128xf32>
    %c8_116 = arith.constant 8 : index
    %c4_117 = arith.constant 4 : index
    %293 = memref.load %arg4[%c8_116, %c4_117] : memref<10x10xf32, #tpu.memory_space<smem>>
    %294 = vector.broadcast %293 : f32 to vector<1x128xf32>
    %295 = arith.mulf %63, %294 : vector<1x128xf32>
    %296 = arith.addf %292, %295 : vector<1x128xf32>
    %c9_118 = arith.constant 9 : index
    %c4_119 = arith.constant 4 : index
    %297 = memref.load %arg4[%c9_118, %c4_119] : memref<10x10xf32, #tpu.memory_space<smem>>
    %298 = vector.broadcast %297 : f32 to vector<1x128xf32>
    %299 = arith.mulf %70, %298 : vector<1x128xf32>
    %300 = arith.addf %296, %299 : vector<1x128xf32>
    %301 = arith.negf %300 : vector<1x128xf32>
    %302 = math.exp %301 : vector<1x128xf32>
    %cst_120 = arith.constant 1.000000e+00 : f32
    %303 = vector.broadcast %cst_120 : f32 to vector<1x128xf32>
    %304 = arith.addf %303, %302 : vector<1x128xf32>
    %305 = arith.divf %303, %304 : vector<1x128xf32>
    %c0_121 = arith.constant 0 : index
    %c5_122 = arith.constant 5 : index
    %306 = memref.load %arg4[%c0_121, %c5_122] : memref<10x10xf32, #tpu.memory_space<smem>>
    %307 = vector.broadcast %306 : f32 to vector<1x128xf32>
    %308 = arith.mulf %7, %307 : vector<1x128xf32>
    %c5_123 = arith.constant 5 : index
    %309 = memref.load %arg5[%c5_123] : memref<10xf32, #tpu.memory_space<smem>>
    %310 = vector.broadcast %309 : f32 to vector<1x128xf32>
    %311 = arith.addf %308, %310 : vector<1x128xf32>
    %c1_124 = arith.constant 1 : index
    %c5_125 = arith.constant 5 : index
    %312 = memref.load %arg4[%c1_124, %c5_125] : memref<10x10xf32, #tpu.memory_space<smem>>
    %313 = vector.broadcast %312 : f32 to vector<1x128xf32>
    %314 = arith.mulf %14, %313 : vector<1x128xf32>
    %315 = arith.addf %311, %314 : vector<1x128xf32>
    %c2_126 = arith.constant 2 : index
    %c5_127 = arith.constant 5 : index
    %316 = memref.load %arg4[%c2_126, %c5_127] : memref<10x10xf32, #tpu.memory_space<smem>>
    %317 = vector.broadcast %316 : f32 to vector<1x128xf32>
    %318 = arith.mulf %21, %317 : vector<1x128xf32>
    %319 = arith.addf %315, %318 : vector<1x128xf32>
    %c3_128 = arith.constant 3 : index
    %c5_129 = arith.constant 5 : index
    %320 = memref.load %arg4[%c3_128, %c5_129] : memref<10x10xf32, #tpu.memory_space<smem>>
    %321 = vector.broadcast %320 : f32 to vector<1x128xf32>
    %322 = arith.mulf %28, %321 : vector<1x128xf32>
    %323 = arith.addf %319, %322 : vector<1x128xf32>
    %c4_130 = arith.constant 4 : index
    %c5_131 = arith.constant 5 : index
    %324 = memref.load %arg4[%c4_130, %c5_131] : memref<10x10xf32, #tpu.memory_space<smem>>
    %325 = vector.broadcast %324 : f32 to vector<1x128xf32>
    %326 = arith.mulf %35, %325 : vector<1x128xf32>
    %327 = arith.addf %323, %326 : vector<1x128xf32>
    %c5_132 = arith.constant 5 : index
    %c5_133 = arith.constant 5 : index
    %328 = memref.load %arg4[%c5_132, %c5_133] : memref<10x10xf32, #tpu.memory_space<smem>>
    %329 = vector.broadcast %328 : f32 to vector<1x128xf32>
    %330 = arith.mulf %42, %329 : vector<1x128xf32>
    %331 = arith.addf %327, %330 : vector<1x128xf32>
    %c6_134 = arith.constant 6 : index
    %c5_135 = arith.constant 5 : index
    %332 = memref.load %arg4[%c6_134, %c5_135] : memref<10x10xf32, #tpu.memory_space<smem>>
    %333 = vector.broadcast %332 : f32 to vector<1x128xf32>
    %334 = arith.mulf %49, %333 : vector<1x128xf32>
    %335 = arith.addf %331, %334 : vector<1x128xf32>
    %c7_136 = arith.constant 7 : index
    %c5_137 = arith.constant 5 : index
    %336 = memref.load %arg4[%c7_136, %c5_137] : memref<10x10xf32, #tpu.memory_space<smem>>
    %337 = vector.broadcast %336 : f32 to vector<1x128xf32>
    %338 = arith.mulf %56, %337 : vector<1x128xf32>
    %339 = arith.addf %335, %338 : vector<1x128xf32>
    %c8_138 = arith.constant 8 : index
    %c5_139 = arith.constant 5 : index
    %340 = memref.load %arg4[%c8_138, %c5_139] : memref<10x10xf32, #tpu.memory_space<smem>>
    %341 = vector.broadcast %340 : f32 to vector<1x128xf32>
    %342 = arith.mulf %63, %341 : vector<1x128xf32>
    %343 = arith.addf %339, %342 : vector<1x128xf32>
    %c9_140 = arith.constant 9 : index
    %c5_141 = arith.constant 5 : index
    %344 = memref.load %arg4[%c9_140, %c5_141] : memref<10x10xf32, #tpu.memory_space<smem>>
    %345 = vector.broadcast %344 : f32 to vector<1x128xf32>
    %346 = arith.mulf %70, %345 : vector<1x128xf32>
    %347 = arith.addf %343, %346 : vector<1x128xf32>
    %348 = arith.negf %347 : vector<1x128xf32>
    %349 = math.exp %348 : vector<1x128xf32>
    %cst_142 = arith.constant 1.000000e+00 : f32
    %350 = vector.broadcast %cst_142 : f32 to vector<1x128xf32>
    %351 = arith.addf %350, %349 : vector<1x128xf32>
    %352 = arith.divf %350, %351 : vector<1x128xf32>
    %c0_143 = arith.constant 0 : index
    %c6_144 = arith.constant 6 : index
    %353 = memref.load %arg4[%c0_143, %c6_144] : memref<10x10xf32, #tpu.memory_space<smem>>
    %354 = vector.broadcast %353 : f32 to vector<1x128xf32>
    %355 = arith.mulf %7, %354 : vector<1x128xf32>
    %c6_145 = arith.constant 6 : index
    %356 = memref.load %arg5[%c6_145] : memref<10xf32, #tpu.memory_space<smem>>
    %357 = vector.broadcast %356 : f32 to vector<1x128xf32>
    %358 = arith.addf %355, %357 : vector<1x128xf32>
    %c1_146 = arith.constant 1 : index
    %c6_147 = arith.constant 6 : index
    %359 = memref.load %arg4[%c1_146, %c6_147] : memref<10x10xf32, #tpu.memory_space<smem>>
    %360 = vector.broadcast %359 : f32 to vector<1x128xf32>
    %361 = arith.mulf %14, %360 : vector<1x128xf32>
    %362 = arith.addf %358, %361 : vector<1x128xf32>
    %c2_148 = arith.constant 2 : index
    %c6_149 = arith.constant 6 : index
    %363 = memref.load %arg4[%c2_148, %c6_149] : memref<10x10xf32, #tpu.memory_space<smem>>
    %364 = vector.broadcast %363 : f32 to vector<1x128xf32>
    %365 = arith.mulf %21, %364 : vector<1x128xf32>
    %366 = arith.addf %362, %365 : vector<1x128xf32>
    %c3_150 = arith.constant 3 : index
    %c6_151 = arith.constant 6 : index
    %367 = memref.load %arg4[%c3_150, %c6_151] : memref<10x10xf32, #tpu.memory_space<smem>>
    %368 = vector.broadcast %367 : f32 to vector<1x128xf32>
    %369 = arith.mulf %28, %368 : vector<1x128xf32>
    %370 = arith.addf %366, %369 : vector<1x128xf32>
    %c4_152 = arith.constant 4 : index
    %c6_153 = arith.constant 6 : index
    %371 = memref.load %arg4[%c4_152, %c6_153] : memref<10x10xf32, #tpu.memory_space<smem>>
    %372 = vector.broadcast %371 : f32 to vector<1x128xf32>
    %373 = arith.mulf %35, %372 : vector<1x128xf32>
    %374 = arith.addf %370, %373 : vector<1x128xf32>
    %c5_154 = arith.constant 5 : index
    %c6_155 = arith.constant 6 : index
    %375 = memref.load %arg4[%c5_154, %c6_155] : memref<10x10xf32, #tpu.memory_space<smem>>
    %376 = vector.broadcast %375 : f32 to vector<1x128xf32>
    %377 = arith.mulf %42, %376 : vector<1x128xf32>
    %378 = arith.addf %374, %377 : vector<1x128xf32>
    %c6_156 = arith.constant 6 : index
    %c6_157 = arith.constant 6 : index
    %379 = memref.load %arg4[%c6_156, %c6_157] : memref<10x10xf32, #tpu.memory_space<smem>>
    %380 = vector.broadcast %379 : f32 to vector<1x128xf32>
    %381 = arith.mulf %49, %380 : vector<1x128xf32>
    %382 = arith.addf %378, %381 : vector<1x128xf32>
    %c7_158 = arith.constant 7 : index
    %c6_159 = arith.constant 6 : index
    %383 = memref.load %arg4[%c7_158, %c6_159] : memref<10x10xf32, #tpu.memory_space<smem>>
    %384 = vector.broadcast %383 : f32 to vector<1x128xf32>
    %385 = arith.mulf %56, %384 : vector<1x128xf32>
    %386 = arith.addf %382, %385 : vector<1x128xf32>
    %c8_160 = arith.constant 8 : index
    %c6_161 = arith.constant 6 : index
    %387 = memref.load %arg4[%c8_160, %c6_161] : memref<10x10xf32, #tpu.memory_space<smem>>
    %388 = vector.broadcast %387 : f32 to vector<1x128xf32>
    %389 = arith.mulf %63, %388 : vector<1x128xf32>
    %390 = arith.addf %386, %389 : vector<1x128xf32>
    %c9_162 = arith.constant 9 : index
    %c6_163 = arith.constant 6 : index
    %391 = memref.load %arg4[%c9_162, %c6_163] : memref<10x10xf32, #tpu.memory_space<smem>>
    %392 = vector.broadcast %391 : f32 to vector<1x128xf32>
    %393 = arith.mulf %70, %392 : vector<1x128xf32>
    %394 = arith.addf %390, %393 : vector<1x128xf32>
    %395 = arith.negf %394 : vector<1x128xf32>
    %396 = math.exp %395 : vector<1x128xf32>
    %cst_164 = arith.constant 1.000000e+00 : f32
    %397 = vector.broadcast %cst_164 : f32 to vector<1x128xf32>
    %398 = arith.addf %397, %396 : vector<1x128xf32>
    %399 = arith.divf %397, %398 : vector<1x128xf32>
    %c0_165 = arith.constant 0 : index
    %c7_166 = arith.constant 7 : index
    %400 = memref.load %arg4[%c0_165, %c7_166] : memref<10x10xf32, #tpu.memory_space<smem>>
    %401 = vector.broadcast %400 : f32 to vector<1x128xf32>
    %402 = arith.mulf %7, %401 : vector<1x128xf32>
    %c7_167 = arith.constant 7 : index
    %403 = memref.load %arg5[%c7_167] : memref<10xf32, #tpu.memory_space<smem>>
    %404 = vector.broadcast %403 : f32 to vector<1x128xf32>
    %405 = arith.addf %402, %404 : vector<1x128xf32>
    %c1_168 = arith.constant 1 : index
    %c7_169 = arith.constant 7 : index
    %406 = memref.load %arg4[%c1_168, %c7_169] : memref<10x10xf32, #tpu.memory_space<smem>>
    %407 = vector.broadcast %406 : f32 to vector<1x128xf32>
    %408 = arith.mulf %14, %407 : vector<1x128xf32>
    %409 = arith.addf %405, %408 : vector<1x128xf32>
    %c2_170 = arith.constant 2 : index
    %c7_171 = arith.constant 7 : index
    %410 = memref.load %arg4[%c2_170, %c7_171] : memref<10x10xf32, #tpu.memory_space<smem>>
    %411 = vector.broadcast %410 : f32 to vector<1x128xf32>
    %412 = arith.mulf %21, %411 : vector<1x128xf32>
    %413 = arith.addf %409, %412 : vector<1x128xf32>
    %c3_172 = arith.constant 3 : index
    %c7_173 = arith.constant 7 : index
    %414 = memref.load %arg4[%c3_172, %c7_173] : memref<10x10xf32, #tpu.memory_space<smem>>
    %415 = vector.broadcast %414 : f32 to vector<1x128xf32>
    %416 = arith.mulf %28, %415 : vector<1x128xf32>
    %417 = arith.addf %413, %416 : vector<1x128xf32>
    %c4_174 = arith.constant 4 : index
    %c7_175 = arith.constant 7 : index
    %418 = memref.load %arg4[%c4_174, %c7_175] : memref<10x10xf32, #tpu.memory_space<smem>>
    %419 = vector.broadcast %418 : f32 to vector<1x128xf32>
    %420 = arith.mulf %35, %419 : vector<1x128xf32>
    %421 = arith.addf %417, %420 : vector<1x128xf32>
    %c5_176 = arith.constant 5 : index
    %c7_177 = arith.constant 7 : index
    %422 = memref.load %arg4[%c5_176, %c7_177] : memref<10x10xf32, #tpu.memory_space<smem>>
    %423 = vector.broadcast %422 : f32 to vector<1x128xf32>
    %424 = arith.mulf %42, %423 : vector<1x128xf32>
    %425 = arith.addf %421, %424 : vector<1x128xf32>
    %c6_178 = arith.constant 6 : index
    %c7_179 = arith.constant 7 : index
    %426 = memref.load %arg4[%c6_178, %c7_179] : memref<10x10xf32, #tpu.memory_space<smem>>
    %427 = vector.broadcast %426 : f32 to vector<1x128xf32>
    %428 = arith.mulf %49, %427 : vector<1x128xf32>
    %429 = arith.addf %425, %428 : vector<1x128xf32>
    %c7_180 = arith.constant 7 : index
    %c7_181 = arith.constant 7 : index
    %430 = memref.load %arg4[%c7_180, %c7_181] : memref<10x10xf32, #tpu.memory_space<smem>>
    %431 = vector.broadcast %430 : f32 to vector<1x128xf32>
    %432 = arith.mulf %56, %431 : vector<1x128xf32>
    %433 = arith.addf %429, %432 : vector<1x128xf32>
    %c8_182 = arith.constant 8 : index
    %c7_183 = arith.constant 7 : index
    %434 = memref.load %arg4[%c8_182, %c7_183] : memref<10x10xf32, #tpu.memory_space<smem>>
    %435 = vector.broadcast %434 : f32 to vector<1x128xf32>
    %436 = arith.mulf %63, %435 : vector<1x128xf32>
    %437 = arith.addf %433, %436 : vector<1x128xf32>
    %c9_184 = arith.constant 9 : index
    %c7_185 = arith.constant 7 : index
    %438 = memref.load %arg4[%c9_184, %c7_185] : memref<10x10xf32, #tpu.memory_space<smem>>
    %439 = vector.broadcast %438 : f32 to vector<1x128xf32>
    %440 = arith.mulf %70, %439 : vector<1x128xf32>
    %441 = arith.addf %437, %440 : vector<1x128xf32>
    %442 = arith.negf %441 : vector<1x128xf32>
    %443 = math.exp %442 : vector<1x128xf32>
    %cst_186 = arith.constant 1.000000e+00 : f32
    %444 = vector.broadcast %cst_186 : f32 to vector<1x128xf32>
    %445 = arith.addf %444, %443 : vector<1x128xf32>
    %446 = arith.divf %444, %445 : vector<1x128xf32>
    %c0_187 = arith.constant 0 : index
    %c8_188 = arith.constant 8 : index
    %447 = memref.load %arg4[%c0_187, %c8_188] : memref<10x10xf32, #tpu.memory_space<smem>>
    %448 = vector.broadcast %447 : f32 to vector<1x128xf32>
    %449 = arith.mulf %7, %448 : vector<1x128xf32>
    %c8_189 = arith.constant 8 : index
    %450 = memref.load %arg5[%c8_189] : memref<10xf32, #tpu.memory_space<smem>>
    %451 = vector.broadcast %450 : f32 to vector<1x128xf32>
    %452 = arith.addf %449, %451 : vector<1x128xf32>
    %c1_190 = arith.constant 1 : index
    %c8_191 = arith.constant 8 : index
    %453 = memref.load %arg4[%c1_190, %c8_191] : memref<10x10xf32, #tpu.memory_space<smem>>
    %454 = vector.broadcast %453 : f32 to vector<1x128xf32>
    %455 = arith.mulf %14, %454 : vector<1x128xf32>
    %456 = arith.addf %452, %455 : vector<1x128xf32>
    %c2_192 = arith.constant 2 : index
    %c8_193 = arith.constant 8 : index
    %457 = memref.load %arg4[%c2_192, %c8_193] : memref<10x10xf32, #tpu.memory_space<smem>>
    %458 = vector.broadcast %457 : f32 to vector<1x128xf32>
    %459 = arith.mulf %21, %458 : vector<1x128xf32>
    %460 = arith.addf %456, %459 : vector<1x128xf32>
    %c3_194 = arith.constant 3 : index
    %c8_195 = arith.constant 8 : index
    %461 = memref.load %arg4[%c3_194, %c8_195] : memref<10x10xf32, #tpu.memory_space<smem>>
    %462 = vector.broadcast %461 : f32 to vector<1x128xf32>
    %463 = arith.mulf %28, %462 : vector<1x128xf32>
    %464 = arith.addf %460, %463 : vector<1x128xf32>
    %c4_196 = arith.constant 4 : index
    %c8_197 = arith.constant 8 : index
    %465 = memref.load %arg4[%c4_196, %c8_197] : memref<10x10xf32, #tpu.memory_space<smem>>
    %466 = vector.broadcast %465 : f32 to vector<1x128xf32>
    %467 = arith.mulf %35, %466 : vector<1x128xf32>
    %468 = arith.addf %464, %467 : vector<1x128xf32>
    %c5_198 = arith.constant 5 : index
    %c8_199 = arith.constant 8 : index
    %469 = memref.load %arg4[%c5_198, %c8_199] : memref<10x10xf32, #tpu.memory_space<smem>>
    %470 = vector.broadcast %469 : f32 to vector<1x128xf32>
    %471 = arith.mulf %42, %470 : vector<1x128xf32>
    %472 = arith.addf %468, %471 : vector<1x128xf32>
    %c6_200 = arith.constant 6 : index
    %c8_201 = arith.constant 8 : index
    %473 = memref.load %arg4[%c6_200, %c8_201] : memref<10x10xf32, #tpu.memory_space<smem>>
    %474 = vector.broadcast %473 : f32 to vector<1x128xf32>
    %475 = arith.mulf %49, %474 : vector<1x128xf32>
    %476 = arith.addf %472, %475 : vector<1x128xf32>
    %c7_202 = arith.constant 7 : index
    %c8_203 = arith.constant 8 : index
    %477 = memref.load %arg4[%c7_202, %c8_203] : memref<10x10xf32, #tpu.memory_space<smem>>
    %478 = vector.broadcast %477 : f32 to vector<1x128xf32>
    %479 = arith.mulf %56, %478 : vector<1x128xf32>
    %480 = arith.addf %476, %479 : vector<1x128xf32>
    %c8_204 = arith.constant 8 : index
    %c8_205 = arith.constant 8 : index
    %481 = memref.load %arg4[%c8_204, %c8_205] : memref<10x10xf32, #tpu.memory_space<smem>>
    %482 = vector.broadcast %481 : f32 to vector<1x128xf32>
    %483 = arith.mulf %63, %482 : vector<1x128xf32>
    %484 = arith.addf %480, %483 : vector<1x128xf32>
    %c9_206 = arith.constant 9 : index
    %c8_207 = arith.constant 8 : index
    %485 = memref.load %arg4[%c9_206, %c8_207] : memref<10x10xf32, #tpu.memory_space<smem>>
    %486 = vector.broadcast %485 : f32 to vector<1x128xf32>
    %487 = arith.mulf %70, %486 : vector<1x128xf32>
    %488 = arith.addf %484, %487 : vector<1x128xf32>
    %489 = arith.negf %488 : vector<1x128xf32>
    %490 = math.exp %489 : vector<1x128xf32>
    %cst_208 = arith.constant 1.000000e+00 : f32
    %491 = vector.broadcast %cst_208 : f32 to vector<1x128xf32>
    %492 = arith.addf %491, %490 : vector<1x128xf32>
    %493 = arith.divf %491, %492 : vector<1x128xf32>
    %c0_209 = arith.constant 0 : index
    %c9_210 = arith.constant 9 : index
    %494 = memref.load %arg4[%c0_209, %c9_210] : memref<10x10xf32, #tpu.memory_space<smem>>
    %495 = vector.broadcast %494 : f32 to vector<1x128xf32>
    %496 = arith.mulf %7, %495 : vector<1x128xf32>
    %c9_211 = arith.constant 9 : index
    %497 = memref.load %arg5[%c9_211] : memref<10xf32, #tpu.memory_space<smem>>
    %498 = vector.broadcast %497 : f32 to vector<1x128xf32>
    %499 = arith.addf %496, %498 : vector<1x128xf32>
    %c1_212 = arith.constant 1 : index
    %c9_213 = arith.constant 9 : index
    %500 = memref.load %arg4[%c1_212, %c9_213] : memref<10x10xf32, #tpu.memory_space<smem>>
    %501 = vector.broadcast %500 : f32 to vector<1x128xf32>
    %502 = arith.mulf %14, %501 : vector<1x128xf32>
    %503 = arith.addf %499, %502 : vector<1x128xf32>
    %c2_214 = arith.constant 2 : index
    %c9_215 = arith.constant 9 : index
    %504 = memref.load %arg4[%c2_214, %c9_215] : memref<10x10xf32, #tpu.memory_space<smem>>
    %505 = vector.broadcast %504 : f32 to vector<1x128xf32>
    %506 = arith.mulf %21, %505 : vector<1x128xf32>
    %507 = arith.addf %503, %506 : vector<1x128xf32>
    %c3_216 = arith.constant 3 : index
    %c9_217 = arith.constant 9 : index
    %508 = memref.load %arg4[%c3_216, %c9_217] : memref<10x10xf32, #tpu.memory_space<smem>>
    %509 = vector.broadcast %508 : f32 to vector<1x128xf32>
    %510 = arith.mulf %28, %509 : vector<1x128xf32>
    %511 = arith.addf %507, %510 : vector<1x128xf32>
    %c4_218 = arith.constant 4 : index
    %c9_219 = arith.constant 9 : index
    %512 = memref.load %arg4[%c4_218, %c9_219] : memref<10x10xf32, #tpu.memory_space<smem>>
    %513 = vector.broadcast %512 : f32 to vector<1x128xf32>
    %514 = arith.mulf %35, %513 : vector<1x128xf32>
    %515 = arith.addf %511, %514 : vector<1x128xf32>
    %c5_220 = arith.constant 5 : index
    %c9_221 = arith.constant 9 : index
    %516 = memref.load %arg4[%c5_220, %c9_221] : memref<10x10xf32, #tpu.memory_space<smem>>
    %517 = vector.broadcast %516 : f32 to vector<1x128xf32>
    %518 = arith.mulf %42, %517 : vector<1x128xf32>
    %519 = arith.addf %515, %518 : vector<1x128xf32>
    %c6_222 = arith.constant 6 : index
    %c9_223 = arith.constant 9 : index
    %520 = memref.load %arg4[%c6_222, %c9_223] : memref<10x10xf32, #tpu.memory_space<smem>>
    %521 = vector.broadcast %520 : f32 to vector<1x128xf32>
    %522 = arith.mulf %49, %521 : vector<1x128xf32>
    %523 = arith.addf %519, %522 : vector<1x128xf32>
    %c7_224 = arith.constant 7 : index
    %c9_225 = arith.constant 9 : index
    %524 = memref.load %arg4[%c7_224, %c9_225] : memref<10x10xf32, #tpu.memory_space<smem>>
    %525 = vector.broadcast %524 : f32 to vector<1x128xf32>
    %526 = arith.mulf %56, %525 : vector<1x128xf32>
    %527 = arith.addf %523, %526 : vector<1x128xf32>
    %c8_226 = arith.constant 8 : index
    %c9_227 = arith.constant 9 : index
    %528 = memref.load %arg4[%c8_226, %c9_227] : memref<10x10xf32, #tpu.memory_space<smem>>
    %529 = vector.broadcast %528 : f32 to vector<1x128xf32>
    %530 = arith.mulf %63, %529 : vector<1x128xf32>
    %531 = arith.addf %527, %530 : vector<1x128xf32>
    %c9_228 = arith.constant 9 : index
    %c9_229 = arith.constant 9 : index
    %532 = memref.load %arg4[%c9_228, %c9_229] : memref<10x10xf32, #tpu.memory_space<smem>>
    %533 = vector.broadcast %532 : f32 to vector<1x128xf32>
    %534 = arith.mulf %70, %533 : vector<1x128xf32>
    %535 = arith.addf %531, %534 : vector<1x128xf32>
    %536 = arith.negf %535 : vector<1x128xf32>
    %537 = math.exp %536 : vector<1x128xf32>
    %cst_230 = arith.constant 1.000000e+00 : f32
    %538 = vector.broadcast %cst_230 : f32 to vector<1x128xf32>
    %539 = arith.addf %538, %537 : vector<1x128xf32>
    %540 = arith.divf %538, %539 : vector<1x128xf32>
    %c0_231 = arith.constant 0 : index
    %541 = memref.load %arg6[%c0_231] : memref<10xf32, #tpu.memory_space<smem>>
    %542 = vector.broadcast %541 : f32 to vector<1x128xf32>
    %543 = arith.mulf %117, %542 : vector<1x128xf32>
    %c0_232 = arith.constant 0 : index
    %544 = memref.load %arg7[%c0_232] : memref<1xf32, #tpu.memory_space<smem>>
    %545 = vector.broadcast %544 : f32 to vector<1x128xf32>
    %546 = arith.addf %543, %545 : vector<1x128xf32>
    %c1_233 = arith.constant 1 : index
    %547 = memref.load %arg6[%c1_233] : memref<10xf32, #tpu.memory_space<smem>>
    %548 = vector.broadcast %547 : f32 to vector<1x128xf32>
    %549 = arith.mulf %164, %548 : vector<1x128xf32>
    %550 = arith.addf %546, %549 : vector<1x128xf32>
    %c2_234 = arith.constant 2 : index
    %551 = memref.load %arg6[%c2_234] : memref<10xf32, #tpu.memory_space<smem>>
    %552 = vector.broadcast %551 : f32 to vector<1x128xf32>
    %553 = arith.mulf %211, %552 : vector<1x128xf32>
    %554 = arith.addf %550, %553 : vector<1x128xf32>
    %c3_235 = arith.constant 3 : index
    %555 = memref.load %arg6[%c3_235] : memref<10xf32, #tpu.memory_space<smem>>
    %556 = vector.broadcast %555 : f32 to vector<1x128xf32>
    %557 = arith.mulf %258, %556 : vector<1x128xf32>
    %558 = arith.addf %554, %557 : vector<1x128xf32>
    %c4_236 = arith.constant 4 : index
    %559 = memref.load %arg6[%c4_236] : memref<10xf32, #tpu.memory_space<smem>>
    %560 = vector.broadcast %559 : f32 to vector<1x128xf32>
    %561 = arith.mulf %305, %560 : vector<1x128xf32>
    %562 = arith.addf %558, %561 : vector<1x128xf32>
    %c5_237 = arith.constant 5 : index
    %563 = memref.load %arg6[%c5_237] : memref<10xf32, #tpu.memory_space<smem>>
    %564 = vector.broadcast %563 : f32 to vector<1x128xf32>
    %565 = arith.mulf %352, %564 : vector<1x128xf32>
    %566 = arith.addf %562, %565 : vector<1x128xf32>
    %c6_238 = arith.constant 6 : index
    %567 = memref.load %arg6[%c6_238] : memref<10xf32, #tpu.memory_space<smem>>
    %568 = vector.broadcast %567 : f32 to vector<1x128xf32>
    %569 = arith.mulf %399, %568 : vector<1x128xf32>
    %570 = arith.addf %566, %569 : vector<1x128xf32>
    %c7_239 = arith.constant 7 : index
    %571 = memref.load %arg6[%c7_239] : memref<10xf32, #tpu.memory_space<smem>>
    %572 = vector.broadcast %571 : f32 to vector<1x128xf32>
    %573 = arith.mulf %446, %572 : vector<1x128xf32>
    %574 = arith.addf %570, %573 : vector<1x128xf32>
    %c8_240 = arith.constant 8 : index
    %575 = memref.load %arg6[%c8_240] : memref<10xf32, #tpu.memory_space<smem>>
    %576 = vector.broadcast %575 : f32 to vector<1x128xf32>
    %577 = arith.mulf %493, %576 : vector<1x128xf32>
    %578 = arith.addf %574, %577 : vector<1x128xf32>
    %c9_241 = arith.constant 9 : index
    %579 = memref.load %arg6[%c9_241] : memref<10xf32, #tpu.memory_space<smem>>
    %580 = vector.broadcast %579 : f32 to vector<1x128xf32>
    %581 = arith.mulf %540, %580 : vector<1x128xf32>
    %582 = arith.addf %578, %581 : vector<1x128xf32>
    %c0_242 = arith.constant 0 : index
    %c0_243 = arith.constant 0 : index
    %583 = vector.load %arg8[%c0_242, %c0_243] : memref<1x128xf32, #tpu.memory_space<vmem>>, vector<1x128xf32>
    tpu.vector_store %arg8[%c0_242, %c0_243], %582 {strides = array<i32>} : memref<1x128xf32, #tpu.memory_space<vmem>>, vector<1x128xf32>,
    return
  }
  func.func @transform_0(%arg0: i32) -> (i32, i32) {
    %c0_i32 = arith.constant 0 : i32
    %c0_i32_0 = arith.constant 0 : i32
    return %arg0, %c0_i32 : i32, i32
  }
  func.func @transform_1(%arg0: i32) -> i32 {
    %c0_i32 = arith.constant 0 : i32
    %c0_i32_0 = arith.constant 0 : i32
    return %c0_i32 : i32
  }
  func.func @transform_2(%arg0: i32) -> i32 {
    %c0_i32 = arith.constant 0 : i32
    %c0_i32_0 = arith.constant 0 : i32
    return %c0_i32 : i32
  }
  func.func @transform_3(%arg0: i32) -> (i32, i32) {
    %c0_i32 = arith.constant 0 : i32
    %c0_i32_0 = arith.constant 0 : i32
    %c0_i32_1 = arith.constant 0 : i32
    return %c0_i32, %c0_i32_0 : i32, i32
  }
  func.func @transform_4(%arg0: i32) -> i32 {
    %c0_i32 = arith.constant 0 : i32
    %c0_i32_0 = arith.constant 0 : i32
    return %c0_i32 : i32
  }
  func.func @transform_5(%arg0: i32) -> i32 {
    %c0_i32 = arith.constant 0 : i32
    %c0_i32_0 = arith.constant 0 : i32
    return %c0_i32 : i32
  }
  func.func @transform_6(%arg0: i32) -> i32 {
    %c0_i32 = arith.constant 0 : i32
    %c0_i32_0 = arith.constant 0 : i32
    return %c0_i32 : i32
  }
  func.func @transform_7(%arg0: i32) -> (i32, i32) {
    %c0_i32 = arith.constant 0 : i32
    %c0_i32_0 = arith.constant 0 : i32
    return %arg0, %c0_i32 : i32, i32
  }
}

</mosaic_0001>

<bundles_post_ra>
// kernel: mlp_forward.1
= control target key start
LH: loop header
LB: loop body
LE: loop exit
PB: predicated region body
PF: predicated region fallthrough
CT: control target
= control target key end

     0   :  { %13 = vsyncpa [#allocation4], 0  ;;  %s1566_s0 = inlined_call_operand.vmem [shape: f32[1,128], index: 0, kind: input, shape index: {}]   ;;  %s1567_s1 = inlined_call_operand.vmem [shape: f32[10], index: 1, kind: input, shape index: {}]   ;;  %s1568_s2 = inlined_call_operand.vmem [shape: f32[10], index: 2, kind: input, shape index: {}]   ;;  %s1569_s3 = inlined_call_operand.vmem [shape: f32[10,10], index: 3, kind: input, shape index: {}]   ;;  %s1570_s4 = inlined_call_operand.vmem [shape: f32[10], index: 4, kind: input, shape index: {}]   ;;  %s1571_s5 = inlined_call_operand.vmem [shape: f32[10], index: 5, kind: input, shape index: {}]   ;;  %s1572_s6 = inlined_call_operand.<no memory space> [shape: f32[1], index: 6, kind: input, shape index: {}]   ;;  %s1573_s7 = inlined_call_operand.vmem [shape: f32[1,128], index: 7, kind: output, shape index: {}]  }
   0x1   :  { %14 = vsyncpa [#allocation6], 0  ;;  %s34_s26 = sshll.u32 %s1568_s2, 4  ;;  %s35_s26 = int_to_ptr.vmem [resolvable:$true] %s34_s26 }
   0x2   :  { %15 = vsyncpa [#allocation9], 0  ;;  %s56_s29 = sshll.u32 %s1570_s4, 4  ;;  %s901_s30 = scalar_lea.vmem %s35_s26, 16  ;;  %s57_s29 = int_to_ptr.vmem [resolvable:$true] %s56_s29 }
   0x3   :  { %p902_p0 = scmp.ne.s32.totalorder %s35_s26, %s901_s30  ;;  %p906_p1 = scmp.lt.s32.totalorder %s35_s26, %s35_s26 }
   0x4   :  { %p907_p2 = scmp.lt.s32.totalorder %s901_s30, %s901_s30 }
   0x6   :  { %p908_p3 = por %p907_p2, %p906_p1 }
   0x8   :  { %p909_p4 = pnand %p908_p3, %p902_p0 }
   0xa   :  { %912 = shalt.err (!%p909_p4)
}
   0xb   :  { %s967_s8 = smov [#allocation5]   ;;  %s913_s9 = scalar_lea.vmem %s57_s29, 16 }
   0xc   :  { %37 = dma.vmem_to_smem %s35_s26, 16, %s967_s8, [#allocation6]  }
   0xd   :  { %p914_p5 = scmp.ne.s32.totalorder %s57_s29, %s913_s9  ;;  %p918_p6 = scmp.lt.s32.totalorder %s57_s29, %s57_s29 }
   0xe   :  { %p919_p7 = scmp.lt.s32.totalorder %s913_s9, %s913_s9 }
  0x10   :  { %p920_p8 = por %p919_p7, %p918_p6 }
  0x12   :  { %p921_p9 = pnand %p920_p8, %p914_p5 }
  0x14   :  { %924 = shalt.err (!%p921_p9)
}
  0x15   :  { %s968_s2 = smov [#allocation8]   ;;  %s24_s11 = sshll.u32 %s1567_s1, 4  ;;  %s25_s11 = int_to_ptr.vmem [resolvable:$true] %s24_s11 }
  0x16   :  { %59 = dma.vmem_to_smem %s57_s29, 16, %s968_s2, [#allocation9]  }
  0x17   :  { %s43_s14 = sshll.u32 %s1569_s3, 4  ;;  %s925_s15 = scalar_lea.vmem %s25_s11, 16  ;;  %s44_s14 = int_to_ptr.vmem [resolvable:$true] %s43_s14 }
  0x18   :  { %p926_p10 = scmp.ne.s32.totalorder %s25_s11, %s925_s15  ;;  %p930_p11 = scmp.lt.s32.totalorder %s25_s11, %s25_s11 }
  0x19   :  { %p931_p12 = scmp.lt.s32.totalorder %s925_s15, %s925_s15 }
  0x1b   :  { %p932_p13 = por %p931_p12, %p930_p11 }
  0x1d   :  { %p933_p0 = pnand %p932_p13, %p926_p10 }
  0x1f   :  { %936 = shalt.err (!%p933_p0)
}
  0x20   :  { %s969_s16 = smov [#allocation3]   ;;  %s937_s17 = scalar_lea.vmem %s44_s14, 256 }
  0x21   :  { %27 = dma.vmem_to_smem %s25_s11, 16, %s969_s16, [#allocation4]  }
  0x22   :  { %p938_p1 = scmp.ne.s32.totalorder %s44_s14, %s937_s17  ;;  %p942_p2 = scmp.lt.s32.totalorder %s44_s14, %s44_s14 }
  0x23   :  { %p943_p3 = scmp.lt.s32.totalorder %s937_s17, %s937_s17 }
  0x25   :  { %p944_p4 = por %p943_p3, %p942_p2 }
  0x27   :  { %p945_p5 = pnand %p944_p4, %p938_p1 }
  0x29   :  { %948 = shalt.err (!%p945_p5)
}
  0x2a   :  { %s970_s1 = smov [#allocation7]   ;;  %s971_s18 = smov 128  }
  0x2b   :  { %s972_s3 = smov 8   ;;  %s66_s21 = sshll.u32 %s1571_s5, 4  ;;  %s67_s21 = int_to_ptr.vmem [resolvable:$true] %s66_s21 }
  0x2c   :  { %49 = dma.vmem_to_smem %s44_s14, 256, %s970_s1, [#allocation6], %s971_s18, %s971_s18, %s972_s3  }
  0x2d   :  { %s949_s22 = scalar_lea.vmem %s67_s21, 16  ;;  %p954_p7 = scmp.lt.s32.totalorder %s67_s21, %s67_s21 }
  0x2e   :  { %p950_p6 = scmp.ne.s32.totalorder %s67_s21, %s949_s22  ;;  %p955_p8 = scmp.lt.s32.totalorder %s949_s22, %s949_s22 }
  0x30   :  { %p956_p9 = por %p955_p8, %p954_p7 }
  0x32   :  { %p957_p10 = pnand %p956_p9, %p950_p6 }
  0x34   :  { %960 = shalt.err (!%p957_p10)
}
  0x35   :  { %s973_s23 = smov [#allocation10]  }
  0x36   :  { %69 = dma.vmem_to_smem %s67_s21, 16, %s973_s23, [#allocation9]  }
  0x37   :  { %961 = dma.done.wait [#allocation4], 16  }
  0x38   :  { %962 = vsyncadd [#allocation4], 4294967280 }
  0x39   :  { %963 = dma.done.wait [#allocation6], 272  }
  0x3a   :  { %964 = vsyncadd [#allocation6], 4294967024 }
  0x3b   :  { %965 = dma.done.wait [#allocation9], 32  }
  0x3c   :  { %966 = vsyncadd [#allocation9], 4294967264 }
  0x3d   :  { %87 = sfence }
  0x3e   :  { %s89_s24 = sld [smem:[#allocation3]]  ;;  %s689_s5 = sld [smem:[#allocation3 + $0x1]]  ;;  %v1036_v0 = vld [vmem:[%s1566_s0] sm:$0x1] }
  0x3f   :  { %s92_s25 = sld [smem:[#allocation5]]  ;;  %s690_s26 = sld [smem:[#allocation5 + $0x1]] }
  0x40   :  { %s691_s27 = sld [smem:[#allocation3 + $0x2]]  ;;  %s693_s29 = sld [smem:[#allocation3 + $0x3]] }
  0x41   :  { %s1029_s28 = sld [smem:[#allocation5 + $0x2]]  ;;  %s1031_s30 = sld [smem:[#allocation5 + $0x3]] }
  0x42   :  { %s1038_s2 = sld [smem:[#allocation3 + $0x4]]  ;;  %s1042_s10 = sld [smem:[#allocation3 + $0x5]] }
  0x43   :  { %s1040_s4 = sld [smem:[#allocation5 + $0x4]]  ;;  %s1044_s11 = sld [smem:[#allocation5 + $0x5]] }
  0x44   :  { %v90_v1 = vstv %s89_s24  ;;  %s1046_s12 = sld [smem:[#allocation3 + $0x6]]  ;;  %v97_v4 = vstv %s689_s5  ;;  %s1051_s0 = sld [smem:[#allocation3 + $0x7]] }
  0x45   :  { %v93_v2 = vstv %s92_s25  ;;  %s1048_s13 = sld [smem:[#allocation5 + $0x6]]  ;;  %v91_v3 = vmul.f32 %v90_v1, %v1036_v0  ;;  %v100_v5 = vstv %s690_s26  ;;  %s1053_s14 = sld [smem:[#allocation5 + $0x7]]  ;;  %v98_v6 = vmul.f32 %v97_v4, %v1036_v0 }
  0x46   :  { %v104_v7 = vstv %s691_s27  ;;  %s1057_s15 = sld [smem:[#allocation3 + $0x8]]  ;;  %v111_v11 = vstv %s693_s29  ;;  %s1063_s17 = sld [smem:[#allocation3 + $0x9]] }
  0x47   :  { %v107_v8 = vstv %s1029_s28  ;;  %s1059_s16 = sld [smem:[#allocation5 + $0x8]]  ;;  %v94_v9 = vadd.f32 %v93_v2, %v91_v3  ;;  %v105_v10 = vmul.f32 %v104_v7, %v1036_v0  ;;  %v114_v12 = vstv %s1031_s30  ;;  %s1065_s1 = sld [smem:[#allocation5 + $0x9]] }
  0x48   :  { %v101_v13 = vadd.f32 %v100_v5, %v98_v6  ;;  %v112_v14 = vmul.f32 %v111_v11, %v1036_v0  ;;  %v118_v15 = vstv %s1038_s2  ;;  %s1070_s18 = sld [smem:[#allocation7]]  ;;  %v125_v19 = vstv %s1042_s10  ;;  %s1101_s26 = sld [smem:[#allocation7 + $0x1]] }
  0x49   :  { %v121_v16 = vstv %s1040_s4  ;;  %s1072_s3 = sld [smem:[#allocation8]]  ;;  %841 = vtanh.f32 %v94_v9  ;;  %v108_v17 = vadd.f32 %v107_v8, %v105_v10  ;;  %v119_v18 = vmul.f32 %v118_v15, %v1036_v0  ;;  %s1105_s27 = sld [smem:[#allocation8 + $0x1]] }
  0x4a   :  { %s1076_s19 = sld [smem:[#allocation7 + $0x80]]  ;;  %843 = vtanh.f32 %v101_v13  ;;  %v115_v20 = vadd.f32 %v114_v12, %v112_v14  ;;  %v126_v21 = vmul.f32 %v125_v19, %v1036_v0  ;;  %v128_v22 = vstv %s1044_s11  ;;  %s1107_s28 = sld [smem:[#allocation7 + $0x81]] }
  0x4b   :  { %s1078_s20 = sld [smem:[#allocation7 + $0x100]]  ;;  %845 = vtanh.f32 %v108_v17  ;;  %v122_v23 = vadd.f32 %v121_v16, %v119_v18  ;;  %v132_v24 = vstv %s1046_s12  ;;  %v135_v25 = vstv %s1048_s13  ;;  %s1111_s29 = sld [smem:[#allocation7 + $0x101]] }
  0x4c   :  { %s1082_s21 = sld [smem:[#allocation7 + $0x180]]  ;;  %847 = vtanh.f32 %v115_v20  ;;  %v129_v26 = vadd.f32 %v128_v22, %v126_v21  ;;  %v133_v27 = vmul.f32 %v132_v24, %v1036_v0  ;;  %v139_v28 = vstv %s1051_s0  ;;  %s1113_s30 = sld [smem:[#allocation7 + $0x181]] }
  0x4d   :  { %s1084_s22 = sld [smem:[#allocation7 + $0x200]]  ;;  %849 = vtanh.f32 %v122_v23  ;;  %v140_v29 = vmul.f32 %v139_v28, %v1036_v0  ;;  %v142_v30 = vstv %s1053_s14  ;;  %v146_v31 = vstv %s1057_s15  ;;  %s1118_s9 = sld [smem:[#allocation7 + $0x201]] }
  0x4e   :  { %s1088_s23 = sld [smem:[#allocation7 + $0x280]]  ;;  %851 = vtanh.f32 %v129_v26  ;;  %v136_v32 = vadd.f32 %v135_v25, %v133_v27  ;;  %v147_v33 = vmul.f32 %v146_v31, %v1036_v0  ;;  %v149_v34 = vstv %s1059_s16  ;;  %s1123_s2 = sld [smem:[#allocation7 + $0x281]] }
  0x4f   :  { %s1090_s24 = sld [smem:[#allocation7 + $0x300]]  ;;  %v143_v35 = vadd.f32 %v142_v30, %v140_v29  ;;  %v153_v36 = vstv %s1063_s17  ;;  %v156_v37 = vstv %s1065_s1  ;;  %v160_v40 = vstv %s1070_s18  ;;  %s1125_s4 = sld [smem:[#allocation7 + $0x301]] }
  0x50   :  { %s1094_s25 = sld [smem:[#allocation7 + $0x380]]  ;;  %853 = vtanh.f32 %v136_v32  ;;  %v150_v38 = vadd.f32 %v149_v34, %v147_v33  ;;  %v154_v39 = vmul.f32 %v153_v36, %v1036_v0  ;;  %v163_v41 = vstv %s1072_s3  ;;  %s1129_s10 = sld [smem:[#allocation7 + $0x381]] }
  0x51   :  { %s1099_s5 = sld [smem:[#allocation7 + $0x400]]  ;;  %855 = vtanh.f32 %v143_v35  ;;  %v166_v42 = vstv %s1076_s19  ;;  %v170_v44 = vstv %s1078_s20  ;;  %s1137_s11 = sld [smem:[#allocation7 + $0x401]]  ;;  %v208_v53 = vstv %s1101_s26 }
  0x52   :  { %s1116_s8 = sld [smem:[#allocation7 + $0x480]]  ;;  %857 = vtanh.f32 %v150_v38  ;;  %v157_v43 = vadd.f32 %v156_v37, %v154_v39  ;;  %v174_v45 = vstv %s1082_s21  ;;  %v211_v54 = vstv %s1105_s27  ;;  %s1144_s12 = sld [smem:[#allocation7 + $0x481]] }
  0x53   :  { %v1131_v46 = vpop.eup %841  ;;  %v178_v47 = vstv %s1084_s22  ;;  %s1146_s13 = sld [smem:[#allocation7 + $0x2]]  ;;  %v214_v58 = vstv %s1107_s28  ;;  %v218_v59 = vstv %s1111_s29  ;;  %v222_v4 = vstv %s1113_s30  ;;  %s1208_s20 = sld [smem:[#allocation7 + $0x3]] }
  0x54   :  { %v182_v48 = vstv %s1088_s23  ;;  %v1139_v51 = vpop.eup %843  ;;  %859 = vtanh.f32 %v157_v43  ;;  %v161_v52 = vmul.f32 %v1131_v46, %v160_v40  ;;  %v209_v57 = vmul.f32 %v1131_v46, %v208_v53  ;;  %s1154_s0 = sld [smem:[#allocation8 + $0x2]]  ;;  %s1217_s22 = sld [smem:[#allocation8 + $0x3]] }
  0x55   :  { %v186_v49 = vstv %s1090_s24  ;;  %v1148_v55 = vpop.eup %845  ;;  %v167_v56 = vmul.f32 %v1139_v51, %v166_v42  ;;  %v215_v0 = vmul.f32 %v1139_v51, %v214_v58  ;;  %s1161_s14 = sld [smem:[#allocation7 + $0x82]]  ;;  %v226_v5 = vstv %s1118_s9  ;;  %s1221_s23 = sld [smem:[#allocation7 + $0x83]] }
  0x56   :  { %v190_v50 = vstv %s1094_s25  ;;  %v1156_v60 = vpop.eup %847  ;;  %v164_v61 = vadd.f32 %v163_v41, %v161_v52  ;;  %v171_v62 = vmul.f32 %v1148_v55, %v170_v44  ;;  %s1163_s15 = sld [smem:[#allocation7 + $0x102]]  ;;  %v212_v2 = vadd.f32 %v211_v54, %v209_v57  ;;  %s1223_s24 = sld [smem:[#allocation7 + $0x103]] }
  0x57   :  { %v194_v63 = vstv %s1099_s5  ;;  %v1165_v1 = vpop.eup %849  ;;  %v219_v3 = vmul.f32 %v1148_v55, %v218_v59  ;;  %v175_v8 = vmul.f32 %v1156_v60, %v174_v45  ;;  %s1175_s16 = sld [smem:[#allocation7 + $0x182]]  ;;  %v223_v12 = vmul.f32 %v1156_v60, %v222_v4  ;;  %s1231_s25 = sld [smem:[#allocation7 + $0x183]] }
  0x58   :  { %v1170_v6 = vpop.eup %851  ;;  %v168_v7 = vadd.f32 %v167_v56, %v164_v61  ;;  %v179_v9 = vmul.f32 %v1165_v1, %v178_v47  ;;  %v198_v10 = vstv %s1116_s8  ;;  %v216_v11 = vadd.f32 %v215_v0, %v212_v2  ;;  %s1180_s17 = sld [smem:[#allocation7 + $0x202]]  ;;  %s1233_s5 = sld [smem:[#allocation7 + $0x203]] }
  0x59   :  { %v230_v13 = vstv %s1123_s2  ;;  %v234_v14 = vstv %s1125_s4  ;;  %s1182_s1 = sld [smem:[#allocation7 + $0x282]]  ;;  %v183_v17 = vmul.f32 %v1170_v6, %v182_v48  ;;  %v227_v18 = vmul.f32 %v1165_v1, %v226_v5  ;;  %s1240_s26 = sld [smem:[#allocation7 + $0x283]] }
  0x5a   :  { %v1184_v15 = vpop.eup %853  ;;  %v172_v16 = vadd.f32 %v171_v62, %v168_v7  ;;  %v238_v19 = vstv %s1129_s10  ;;  %v220_v22 = vadd.f32 %v219_v3, %v216_v11  ;;  %v231_v23 = vmul.f32 %v1170_v6, %v230_v13  ;;  %s1194_s18 = sld [smem:[#allocation7 + $0x302]]  ;;  %s1242_s27 = sld [smem:[#allocation7 + $0x303]] }
  0x5b   :  { %v1189_v20 = vpop.eup %855  ;;  %v187_v21 = vmul.f32 %v1184_v15, %v186_v49  ;;  %v242_v24 = vstv %s1137_s11  ;;  %s1196_s3 = sld [smem:[#allocation7 + $0x382]]  ;;  %v235_v27 = vmul.f32 %v1184_v15, %v234_v14  ;;  %v246_v28 = vstv %s1144_s12  ;;  %s1251_s28 = sld [smem:[#allocation7 + $0x383]] }
  0x5c   :  { %v1198_v25 = vpop.eup %857  ;;  %v176_v26 = vadd.f32 %v175_v8, %v172_v16  ;;  %v256_v29 = vstv %s1146_s13  ;;  %s1203_s19 = sld [smem:[#allocation7 + $0x402]]  ;;  %v191_v30 = vmul.f32 %v1189_v20, %v190_v50  ;;  %v224_v31 = vadd.f32 %v223_v12, %v220_v22  ;;  %s1253_s29 = sld [smem:[#allocation7 + $0x4]] }
  0x5d   :  { %v239_v32 = vmul.f32 %v1189_v20, %v238_v19  ;;  %v257_v33 = vmul.f32 %v1131_v46, %v256_v29  ;;  %v259_v36 = vstv %s1154_s0  ;;  %v262_v37 = vstv %s1161_s14  ;;  %s1215_s21 = sld [smem:[#allocation7 + $0x482]]  ;;  %s1258_s30 = sld [smem:[#allocation8 + $0x4]] }
  0x5e   :  { %v1210_v34 = vpop.eup %859  ;;  %v180_v35 = vadd.f32 %v179_v9, %v176_v26  ;;  %v266_v38 = vstv %s1163_s15  ;;  %v195_v39 = vmul.f32 %v1198_v25, %v194_v63  ;;  %v228_v40 = vadd.f32 %v227_v18, %v224_v31  ;;  %s1260_s8 = sld [smem:[#allocation7 + $0x84]]  ;;  %s1263_s9 = sld [smem:[#allocation7 + $0x403]] }
  0x5f   :  { %v243_v41 = vmul.f32 %v1198_v25, %v242_v24  ;;  %v260_v42 = vadd.f32 %v259_v36, %v257_v33  ;;  %v263_v44 = vmul.f32 %v1139_v51, %v262_v37  ;;  %v267_v45 = vmul.f32 %v1148_v55, %v266_v38  ;;  %s1268_s2 = sld [smem:[#allocation7 + $0x104]]  ;;  %s1275_s10 = sld [smem:[#allocation7 + $0x483]] }
  0x60   :  { %v184_v43 = vadd.f32 %v183_v17, %v180_v35  ;;  %v270_v47 = vstv %s1175_s16  ;;  %v199_v48 = vmul.f32 %v1210_v34, %v198_v10  ;;  %v232_v49 = vadd.f32 %v231_v23, %v228_v40  ;;  %s1270_s4 = sld [smem:[#allocation7 + $0x184]]  ;;  %s1292_s0 = sld [smem:[#allocation7 + $0x5]] }
  0x61   :  { %v274_v50 = vstv %s1180_s17  ;;  %v278_v52 = vstv %s1182_s1  ;;  %v247_v54 = vmul.f32 %v1210_v34, %v246_v28  ;;  %v264_v56 = vadd.f32 %v263_v44, %v260_v42  ;;  %s1277_s11 = sld [smem:[#allocation7 + $0x204]]  ;;  %s1298_s15 = sld [smem:[#allocation8 + $0x5]] }
  0x62   :  { %v188_v53 = vadd.f32 %v187_v21, %v184_v43  ;;  %v271_v57 = vmul.f32 %v1156_v60, %v270_v47  ;;  %v236_v58 = vadd.f32 %v235_v27, %v232_v49  ;;  %v275_v59 = vmul.f32 %v1165_v1, %v274_v50  ;;  %s1281_s12 = sld [smem:[#allocation7 + $0x284]]  ;;  %s1303_s16 = sld [smem:[#allocation7 + $0x85]] }
  0x63   :  { %v282_v61 = vstv %s1194_s18  ;;  %v286_v62 = vstv %s1196_s3  ;;  %v268_v0 = vadd.f32 %v267_v45, %v264_v56  ;;  %v279_v2 = vmul.f32 %v1170_v6, %v278_v52  ;;  %s1284_s13 = sld [smem:[#allocation7 + $0x304]]  ;;  %s1305_s17 = sld [smem:[#allocation7 + $0x105]] }
  0x64   :  { %v192_v63 = vadd.f32 %v191_v30, %v188_v53  ;;  %v290_v3 = vstv %s1203_s19  ;;  %v240_v4 = vadd.f32 %v239_v32, %v236_v58  ;;  %v283_v5 = vmul.f32 %v1184_v15, %v282_v61  ;;  %s1296_s14 = sld [smem:[#allocation7 + $0x384]]  ;;  %s1316_s3 = sld [smem:[#allocation7 + $0x185]] }
  0x65   :  { %v287_v7 = vmul.f32 %v1189_v20, %v286_v62  ;;  %v304_v8 = vstv %s1208_s20  ;;  %v272_v10 = vadd.f32 %v271_v57, %v268_v0  ;;  %v294_v11 = vstv %s1215_s21  ;;  %s1309_s1 = sld [smem:[#allocation7 + $0x404]]  ;;  %s1320_s19 = sld [smem:[#allocation7 + $0x205]] }
  0x66   :  { %v196_v9 = vadd.f32 %v195_v39, %v192_v63  ;;  %v305_v12 = vmul.f32 %v1131_v46, %v304_v8  ;;  %v244_v13 = vadd.f32 %v243_v41, %v240_v4  ;;  %v307_v14 = vstv %s1217_s22  ;;  %s1311_s18 = sld [smem:[#allocation7 + $0x484]]  ;;  %s1323_s20 = sld [smem:[#allocation7 + $0x285]] }
  0x67   :  { %v310_v16 = vstv %s1221_s23  ;;  %v314_v17 = vstv %s1223_s24  ;;  %v276_v19 = vadd.f32 %v275_v59, %v272_v10  ;;  %v318_v26 = vstv %s1231_s25  ;;  %s1326_s21 = sld [smem:[#allocation7 + $0x305]]  ;;  %s1335_s23 = sld [smem:[#allocation7 + $0x6]] }
  0x68   :  { %v200_v18 = vadd.f32 %v199_v48, %v196_v9  ;;  %v308_v21 = vadd.f32 %v307_v14, %v305_v12  ;;  %v311_v22 = vmul.f32 %v1139_v51, %v310_v16  ;;  %v248_v23 = vadd.f32 %v247_v54, %v244_v13  ;;  %s1333_s22 = sld [smem:[#allocation7 + $0x385]]  ;;  %s1341_s24 = sld [smem:[#allocation8 + $0x6]] }
  0x69   :  { %v315_v24 = vmul.f32 %v1148_v55, %v314_v17  ;;  %v322_v27 = vstv %s1233_s5  ;;  %v280_v29 = vadd.f32 %v279_v2, %v276_v19  ;;  %v319_v31 = vmul.f32 %v1156_v60, %v318_v26  ;;  %s1343_s25 = sld [smem:[#allocation7 + $0x86]] }
  0x6a   :  { %v716_v28 = vmul.f32 -1.442695, %v200_v18  ;;  %v312_v30 = vadd.f32 %v311_v22, %v308_v21  ;;  %v326_v32 = vstv %s1240_s26  ;;  %v330_v33 = vstv %s1242_s27  ;;  %s1347_s5 = sld [smem:[#allocation7 + $0x106]]  ;;  %s1354_s27 = sld [smem:[#allocation7 + $0x405]] }
  0x6b   :  { %v284_v35 = vadd.f32 %v283_v5, %v280_v29  ;;  %v291_v36 = vmul.f32 %v1198_v25, %v290_v3  ;;  %v323_v38 = vmul.f32 %v1165_v1, %v322_v27  ;;  %v728_v39 = vmul.f32 -1.442695, %v248_v23  ;;  %s1349_s26 = sld [smem:[#allocation7 + $0x186]] }
  0x6c   :  { %v316_v37 = vadd.f32 %v315_v24, %v312_v30  ;;  %861 = vpow2.f32 %v716_v28  ;;  %v295_v40 = vmul.f32 %v1210_v34, %v294_v11  ;;  %v327_v43 = vmul.f32 %v1170_v6, %v326_v32 }
  0x6d   :  { %v288_v41 = vadd.f32 %v287_v7, %v284_v35  ;;  %v331_v44 = vmul.f32 %v1184_v15, %v330_v33  ;;  %v334_v45 = vstv %s1251_s28  ;;  %v352_v47 = vstv %s1253_s29  ;;  %s1358_s28 = sld [smem:[#allocation7 + $0x206]]  ;;  %s1362_s29 = sld [smem:[#allocation7 + $0x485]] }
  0x6e   :  { %v320_v42 = vadd.f32 %v319_v31, %v316_v37  ;;  %v355_v48 = vstv %s1258_s30  ;;  %v358_v49 = vstv %s1260_s8  ;;  %v338_v53 = vstv %s1263_s9  ;;  %s1367_s30 = sld [smem:[#allocation7 + $0x286]] }
  0x6f   :  { %v292_v50 = vadd.f32 %v291_v36, %v288_v41  ;;  %v353_v54 = vmul.f32 %v1131_v46, %v352_v47  ;;  %863 = vpow2.f32 %v728_v39  ;;  %v359_v56 = vmul.f32 %v1139_v51, %v358_v49  ;;  %s1369_s8 = sld [smem:[#allocation7 + $0x306]] }
  0x70   :  { %v324_v52 = vadd.f32 %v323_v38, %v320_v42  ;;  %v362_v57 = vstv %s1268_s2  ;;  %v366_v58 = vstv %s1270_s4  ;;  %v335_v61 = vmul.f32 %v1189_v20, %v334_v45  ;;  %s1374_s9 = sld [smem:[#allocation7 + $0x386]]  ;;  %s1379_s2 = sld [smem:[#allocation7 + $0x7]] }
  0x71   :  { %v356_v62 = vadd.f32 %v355_v48, %v353_v54  ;;  %v363_v63 = vmul.f32 %v1148_v55, %v362_v57  ;;  %v296_v0 = vadd.f32 %v295_v40, %v292_v50  ;;  %v339_v2 = vmul.f32 %v1198_v25, %v338_v53  ;;  %s1387_s4 = sld [smem:[#allocation8 + $0x7]] }
  0x72   :  { %v328_v59 = vadd.f32 %v327_v43, %v324_v52  ;;  %v342_v3 = vstv %s1275_s10  ;;  %v370_v4 = vstv %s1277_s11  ;;  %v367_v8 = vmul.f32 %v1156_v60, %v366_v58  ;;  %s1389_s10 = sld [smem:[#allocation7 + $0x87]]  ;;  %s1393_s11 = sld [smem:[#allocation7 + $0x406]] }
  0x73   :  { %v360_v7 = vadd.f32 %v359_v56, %v356_v62  ;;  %v374_v9 = vstv %s1281_s12  ;;  %v378_v10 = vstv %s1284_s13  ;;  %v371_v13 = vmul.f32 %v1165_v1, %v370_v4  ;;  %s1395_s12 = sld [smem:[#allocation7 + $0x486]]  ;;  %s1400_s13 = sld [smem:[#allocation7 + $0x107]] }
  0x74   :  { %v332_v5 = vadd.f32 %v331_v44, %v328_v59  ;;  %v740_v16 = vmul.f32 -1.442695, %v296_v0  ;;  %v343_v17 = vmul.f32 %v1210_v34, %v342_v3  ;;  %v375_v18 = vmul.f32 %v1170_v6, %v374_v9 }
  0x75   :  { %v364_v12 = vadd.f32 %v363_v63, %v360_v7  ;;  %v400_v19 = vstv %s1292_s0  ;;  %v379_v23 = vmul.f32 %v1184_v15, %v378_v10  ;;  %v382_v26 = vstv %s1296_s14  ;;  %s1402_s0 = sld [smem:[#allocation7 + $0x187]] }
  0x76   :  { %v336_v11 = vadd.f32 %v335_v61, %v332_v5  ;;  %v862_v14 = vpop.eup %861  ;;  %v401_v24 = vmul.f32 %v1131_v46, %v400_v19  ;;  %v403_v27 = vstv %s1298_s15  ;;  %v406_v28 = vstv %s1303_s16  ;;  %s1406_s14 = sld [smem:[#allocation7 + $0x207]] }
  0x77   :  { %v368_v22 = vadd.f32 %v367_v8, %v364_v12  ;;  %v410_v29 = vstv %s1305_s17  ;;  %v386_v31 = vstv %s1309_s1  ;;  %v390_v32 = vstv %s1311_s18  ;;  %s1411_s15 = sld [smem:[#allocation7 + $0x287]]  ;;  %s1427_s1 = sld [smem:[#allocation7 + $0x8]] }
  0x78   :  { %v340_v21 = vadd.f32 %v339_v2, %v336_v11  ;;  %v404_v33 = vadd.f32 %v403_v27, %v401_v24  ;;  %v407_v37 = vmul.f32 %v1139_v51, %v406_v28  ;;  %v411_v38 = vmul.f32 %v1148_v55, %v410_v29  ;;  %s1413_s16 = sld [smem:[#allocation7 + $0x307]]  ;;  %s1429_s18 = sld [smem:[#allocation8 + $0x8]] }
  0x79   :  { %v372_v30 = vadd.f32 %v371_v13, %v368_v22  ;;  %v864_v35 = vpop.eup %863  ;;  %v414_v39 = vstv %s1316_s3  ;;  %865 = vpow2.f32 %v740_v16  ;;  %v383_v41 = vmul.f32 %v1189_v20, %v382_v26  ;;  %s1421_s17 = sld [smem:[#allocation7 + $0x387]] }
  0x7a   :  { %v344_v36 = vadd.f32 %v343_v17, %v340_v21  ;;  %v418_v42 = vstv %s1320_s19  ;;  %v204_v43 = vadd.f32 1.0, %v862_v14  ;;  %v408_v44 = vadd.f32 %v407_v37, %v404_v33  ;;  %s1433_s3 = sld [smem:[#allocation7 + $0x407]]  ;;  %s1435_s19 = sld [smem:[#allocation7 + $0x88]] }
  0x7b   :  { %v376_v40 = vadd.f32 %v375_v18, %v372_v30  ;;  %v415_v45 = vmul.f32 %v1156_v60, %v414_v39  ;;  %v422_v47 = vstv %s1323_s20  ;;  %v387_v49 = vmul.f32 %v1198_v25, %v386_v31  ;;  %s1440_s20 = sld [smem:[#allocation7 + $0x108]] }
  0x7c   :  { %v391_v50 = vmul.f32 %v1210_v34, %v390_v32  ;;  %v426_v52 = vstv %s1326_s21  ;;  %v1371_v53 = vadd.f32 1.0, %v864_v35  ;;  %v752_v54 = vmul.f32 -1.442695, %v344_v36  ;;  %s1442_s21 = sld [smem:[#allocation7 + $0x188]] }
  0x7d   :  { %v380_v48 = vadd.f32 %v379_v23, %v376_v40  ;;  %v412_v56 = vadd.f32 %v411_v38, %v408_v44  ;;  %v419_v57 = vmul.f32 %v1165_v1, %v418_v42  ;;  %v423_v59 = vmul.f32 %v1170_v6, %v422_v47 }
  0x7e   :  { %v430_v61 = vstv %s1333_s22  ;;  %v448_v62 = vstv %s1335_s23  ;;  %v427_v0 = vmul.f32 %v1184_v15, %v426_v52  ;;  %v451_v3 = vstv %s1341_s24  ;;  %s1446_s22 = sld [smem:[#allocation7 + $0x487]]  ;;  %s1451_s23 = sld [smem:[#allocation7 + $0x208]] }
  0x7f   :  { %v384_v58 = vadd.f32 %v383_v41, %v380_v48  ;;  %v416_v63 = vadd.f32 %v415_v45, %v412_v56  ;;  %v449_v2 = vmul.f32 %v1131_v46, %v448_v62  ;;  %v454_v5 = vstv %s1343_s25  ;;  %s1453_s24 = sld [smem:[#allocation7 + $0x288]] }
  0x80   :  { %v458_v7 = vstv %s1347_s5  ;;  %v462_v8 = vstv %s1349_s26  ;;  %v434_v10 = vstv %s1354_s27  ;;  %v455_v12 = vmul.f32 %v1139_v51, %v454_v5  ;;  %s1465_s25 = sld [smem:[#allocation7 + $0x308]]  ;;  %s1474_s27 = sld [smem:[#allocation7 + $0x9]] }
  0x81   :  { %v388_v4 = vadd.f32 %v387_v49, %v384_v58  ;;  %v420_v9 = vadd.f32 %v419_v57, %v416_v63  ;;  %v452_v11 = vadd.f32 %v451_v3, %v449_v2  ;;  %v431_v14 = vmul.f32 %v1189_v20, %v430_v61  ;;  %s1467_s5 = sld [smem:[#allocation7 + $0x388]] }
  0x82   :  { %v459_v16 = vmul.f32 %v1148_v55, %v458_v7  ;;  %v466_v17 = vstv %s1358_s28  ;;  %v438_v19 = vstv %s1362_s29  ;;  %v463_v22 = vmul.f32 %v1156_v60, %v462_v8  ;;  %s1472_s26 = sld [smem:[#allocation7 + $0x408]]  ;;  %s1479_s28 = sld [smem:[#allocation8 + $0x9]] }
  0x83   :  { %v392_v13 = vadd.f32 %v391_v50, %v388_v4  ;;  %v424_v18 = vadd.f32 %v423_v59, %v420_v9  ;;  %v456_v21 = vadd.f32 %v455_v12, %v452_v11  ;;  %v866_v23 = vpop.eup %865  ;;  %867 = vrcp.f32 %v204_v43  ;;  %s1484_s29 = sld [smem:[#allocation7 + $0x89]] }
  0x84   :  { %v435_v24 = vmul.f32 %v1198_v25, %v434_v10  ;;  %v470_v26 = vstv %s1367_s30  ;;  %v474_v27 = vstv %s1369_s8  ;;  %v467_v30 = vmul.f32 %v1165_v1, %v466_v17  ;;  %s1486_s30 = sld [smem:[#allocation7 + $0x109]] }
  0x85   :  { %v428_v28 = vadd.f32 %v427_v0, %v424_v18  ;;  %v460_v29 = vadd.f32 %v459_v16, %v456_v21  ;;  %v478_v31 = vstv %s1374_s9  ;;  %869 = vpow2.f32 %v752_v54  ;;  %s1493_s8 = sld [smem:[#allocation7 + $0x189]] }
  0x86   :  { %v764_v32 = vmul.f32 -1.442695, %v392_v13  ;;  %v439_v33 = vmul.f32 %v1210_v34, %v438_v19  ;;  %v496_v35 = vstv %s1379_s2  ;;  %v471_v38 = vmul.f32 %v1170_v6, %v470_v26  ;;  %s1495_s9 = sld [smem:[#allocation7 + $0x209]]  ;;  %s1498_s2 = sld [smem:[#allocation7 + $0x488]] }
  0x87   :  { %v432_v36 = vadd.f32 %v431_v14, %v428_v28  ;;  %v464_v37 = vadd.f32 %v463_v22, %v460_v29  ;;  %v475_v39 = vmul.f32 %v1184_v15, %v474_v27  ;;  %v479_v40 = vmul.f32 %v1189_v20, %v478_v31 }
  0x88   :  { %v497_v41 = vmul.f32 %v1131_v46, %v496_v35  ;;  %v499_v42 = vstv %s1387_s4  ;;  %v502_v43 = vstv %s1389_s10  ;;  %v482_v47 = vstv %s1393_s11  ;;  %s1502_s4 = sld [smem:[#allocation7 + $0x289]] }
  0x89   :  { %v436_v44 = vadd.f32 %v435_v24, %v432_v36  ;;  %v468_v45 = vadd.f32 %v467_v30, %v464_v37  ;;  %v503_v48 = vmul.f32 %v1139_v51, %v502_v43  ;;  %v486_v49 = vstv %s1395_s12  ;;  %s1509_s10 = sld [smem:[#allocation7 + $0x309]]  ;;  %s1521_s12 = sld [smem:[#allocation10]] }
  0x8a   :  { %v500_v50 = vadd.f32 %v499_v42, %v497_v41  ;;  %v506_v52 = vstv %s1400_s13  ;;  %v510_v54 = vstv %s1402_s0  ;;  %v514_v59 = vstv %s1406_s14  ;;  %s1519_s11 = sld [smem:[#allocation7 + $0x389]] }
  0x8b   :  { %v440_v56 = vadd.f32 %v439_v33, %v436_v44  ;;  %v472_v57 = vadd.f32 %v471_v38, %v468_v45  ;;  %v507_v58 = vmul.f32 %v1148_v55, %v506_v52  ;;  %v511_v62 = vmul.f32 %v1156_v60, %v510_v54  ;;  %s1525_s13 = sld [smem:[#allocation7 + $0x409]] }
  0x8c   :  { %v504_v61 = vadd.f32 %v503_v48, %v500_v50  ;;  %v518_v63 = vstv %s1411_s15  ;;  %v522_v0 = vstv %s1413_s16  ;;  %871 = vrcp.f32 %v1371_v53  ;;  %s1530_s0 = sld [smem:[#allocation10 + $0x1]]  ;;  %s1542_s15 = sld [smem:[#allocation10 + $0x2]] }
  0x8d   :  { %v1456_v2 = vadd.f32 1.0, %v866_v23  ;;  %v476_v3 = vadd.f32 %v475_v39, %v472_v57  ;;  %v483_v4 = vmul.f32 %v1198_v25, %v482_v47  ;;  %v1459_v5 = vpop.eup %867  ;;  %873 = vpow2.f32 %v764_v32  ;;  %s1537_s14 = sld [smem:[#allocation7 + $0x489]] }
  0x8e   :  { %v487_v7 = vmul.f32 %v1210_v34, %v486_v49  ;;  %v508_v8 = vadd.f32 %v507_v58, %v504_v61  ;;  %v515_v9 = vmul.f32 %v1165_v1, %v514_v59  ;;  %v776_v10 = vmul.f32 -1.442695, %v440_v56 }
  0x8f   :  { %v480_v53 = vadd.f32 %v479_v40, %v476_v3  ;;  %v519_v11 = vmul.f32 %v1170_v6, %v518_v63  ;;  %v523_v12 = vmul.f32 %v1184_v15, %v522_v0  ;;  %v870_v13 = vpop.eup %869  ;;  %v526_v16 = vstv %s1421_s17 }
  0x90   :  { %v512_v14 = vadd.f32 %v511_v62, %v508_v8  ;;  %v544_v17 = vstv %s1427_s1  ;;  %v547_v18 = vstv %s1429_s18  ;;  %v530_v21 = vstv %s1433_s3  ;;  %s1554_s1 = sld [smem:[#allocation10 + $0x3]]  ;;  %s829_s18 = sld [smem:[#allocation10 + $0x5]] }
  0x91   :  { %v484_v19 = vadd.f32 %v483_v4, %v480_v53  ;;  %v545_v22 = vmul.f32 %v1131_v46, %v544_v17  ;;  %v550_v23 = vstv %s1435_s19  ;;  %v554_v27 = vstv %s1440_s20  ;;  %s830_s3 = sld [smem:[#allocation10 + $0x6]]  ;;  %s831_s19 = sld [smem:[#allocation10 + $0x7]] }
  0x92   :  { %v516_v24 = vadd.f32 %v515_v9, %v512_v14  ;;  %v551_v26 = vmul.f32 %v1139_v51, %v550_v23  ;;  %v558_v28 = vstv %s1442_s21  ;;  %v534_v30 = vstv %s1446_s22  ;;  %s832_s20 = sld [smem:[#allocation10 + $0x8]]  ;;  %s833_s21 = sld [smem:[#allocation10 + $0x9]] }
  0x93   :  { %v488_v29 = vadd.f32 %v487_v7, %v484_v19  ;;  %v548_v31 = vadd.f32 %v547_v18, %v545_v22  ;;  %v555_v32 = vmul.f32 %v1148_v55, %v554_v27  ;;  %v527_v35 = vmul.f32 %v1189_v20, %v526_v16 }
  0x94   :  { %v520_v33 = vadd.f32 %v519_v11, %v516_v24  ;;  %v562_v36 = vstv %s1451_s23  ;;  %v566_v37 = vstv %s1453_s24  ;;  %v348_v38 = vadd.f32 1.0, %v870_v13 }
  0x95   :  { %v788_v39 = vmul.f32 -1.442695, %v488_v29  ;;  %v552_v40 = vadd.f32 %v551_v26, %v548_v31  ;;  %v559_v41 = vmul.f32 %v1156_v60, %v558_v28  ;;  %875 = vpow2.f32 %v776_v10 }
  0x96   :  { %v524_v42 = vadd.f32 %v523_v12, %v520_v33  ;;  %v531_v43 = vmul.f32 %v1198_v25, %v530_v21  ;;  %v535_v44 = vmul.f32 %v1210_v34, %v534_v30  ;;  %v1504_v45 = vpop.eup %871  ;;  %v563_v48 = vmul.f32 %v1165_v1, %v562_v36 }
  0x97   :  { %v556_v47 = vadd.f32 %v555_v32, %v552_v40  ;;  %v567_v49 = vmul.f32 %v1170_v6, %v566_v37  ;;  %v570_v50 = vstv %s1465_s25  ;;  %v874_v52 = vpop.eup %873  ;;  %v574_v56 = vstv %s1467_s5 }
  0x98   :  { %v528_v54 = vadd.f32 %v527_v35, %v524_v42  ;;  %v578_v57 = vstv %s1472_s26  ;;  %v592_v58 = vstv %s1474_s27  ;;  %877 = vpow2.f32 %v788_v39 }
  0x99   :  { %v560_v59 = vadd.f32 %v559_v41, %v556_v47  ;;  %v593_v61 = vmul.f32 %v1131_v46, %v592_v58  ;;  %v595_v62 = vstv %s1479_s28  ;;  %v571_v0 = vmul.f32 %v1184_v15, %v570_v50 }
  0x9a   :  { %v532_v63 = vadd.f32 %v531_v43, %v528_v54  ;;  %v598_v3 = vstv %s1484_s29  ;;  %v602_v4 = vstv %s1486_s30  ;;  %v575_v53 = vmul.f32 %v1189_v20, %v574_v56 }
  0x9b   :  { %v564_v7 = vadd.f32 %v563_v48, %v560_v59  ;;  %v596_v8 = vadd.f32 %v595_v62, %v593_v61  ;;  %v599_v9 = vmul.f32 %v1139_v51, %v598_v3  ;;  %v603_v10 = vmul.f32 %v1148_v55, %v602_v4 }
  0x9c   :  { %v536_v46 = vadd.f32 %v535_v44, %v532_v63  ;;  %v606_v11 = vstv %s1493_s8  ;;  %v610_v12 = vstv %s1495_s9  ;;  %v582_v14 = vstv %s1498_s2 }
  0x9d   :  { %v568_v13 = vadd.f32 %v567_v49, %v564_v7  ;;  %v600_v16 = vadd.f32 %v599_v9, %v596_v8  ;;  %v607_v17 = vmul.f32 %v1156_v60, %v606_v11  ;;  %879 = vrcp.f32 %v1456_v2 }
  0x9e   :  { %v800_v51 = vmul.f32 -1.442695, %v536_v46  ;;  %v579_v55 = vmul.f32 %v1198_v25, %v578_v57  ;;  %v614_v18 = vstv %s1502_s4  ;;  %v611_v22 = vmul.f32 %v1165_v1, %v610_v12 }
  0x9f   :  { %v572_v19 = vadd.f32 %v571_v0, %v568_v13  ;;  %v604_v21 = vadd.f32 %v603_v10, %v600_v16  ;;  %v618_v23 = vstv %s1509_s10  ;;  %v876_v24 = vpop.eup %875  ;;  %881 = vrcp.f32 %v348_v38 }
  0xa0   :  { %v583_v60 = vmul.f32 %v1210_v34, %v582_v14  ;;  %883 = vpow2.f32 %v800_v51  ;;  %v615_v27 = vmul.f32 %v1170_v6, %v614_v18  ;;  %v396_v28 = vadd.f32 1.0, %v874_v52 }
  0xa1   :  { %v576_v2 = vadd.f32 %v575_v53, %v572_v19  ;;  %v608_v26 = vadd.f32 %v607_v17, %v604_v21  ;;  %v619_v29 = vmul.f32 %v1184_v15, %v618_v23  ;;  %v622_v30 = vstv %s1519_s11 }
  0xa2   :  { %v640_v1 = vstv %s1521_s12  ;;  %v878_v31 = vpop.eup %877  ;;  %v626_v35 = vstv %s1525_s13  ;;  %v643_v37 = vstv %s1572_s6  ;;  %v646_v38 = vstv %s1530_s0  ;;  %s828_s6 = sld [smem:[#allocation10 + $0x4]] }
  0xa3   :  { %v580_v32 = vadd.f32 %v579_v55, %v576_v2  ;;  %v612_v33 = vadd.f32 %v611_v22, %v608_v26  ;;  %v641_v36 = vmul.f32 %v1459_v5, %v640_v1  ;;  %v623_v15 = vmul.f32 %v1189_v20, %v622_v30 }
  0xa4   :  { %885 = vrcp.f32 %v396_v28  ;;  %v444_v40 = vadd.f32 1.0, %v876_v24  ;;  %v627_v41 = vmul.f32 %v1198_v25, %v626_v35  ;;  %v630_v42 = vstv %s1537_s14 }
  0xa5   :  { %v584_v6 = vadd.f32 %v583_v60, %v580_v32  ;;  %v616_v39 = vadd.f32 %v615_v27, %v612_v33  ;;  %v644_v5 = vadd.f32 %v643_v37, %v641_v36  ;;  %v647_v47 = vmul.f32 %v1504_v45, %v646_v38 }
  0xa6   :  { %v650_v49 = vstv %s1542_s15  ;;  %v631_v52 = vmul.f32 %v1210_v34, %v630_v42  ;;  %v492_v20 = vadd.f32 1.0, %v878_v31  ;;  %v654_v59 = vstv %s1554_s1 }
  0xa7   :  { %v812_v43 = vmul.f32 -1.442695, %v584_v6  ;;  %v620_v44 = vadd.f32 %v619_v29, %v616_v39  ;;  %v880_v48 = vpop.eup %879  ;;  %v648_v25 = vadd.f32 %v647_v47, %v644_v5  ;;  %v662_v46 = vstv %s829_s18 }
  0xa8   :  { %v651_v58 = vmul.f32 %v880_v48, %v650_v49  ;;  %v658_v4 = vstv %s828_s6  ;;  %v666_v13 = vstv %s830_s3  ;;  %v670_v18 = vstv %s831_s19 }
  0xa9   :  { %887 = vpow2.f32 %v812_v43  ;;  %v624_v50 = vadd.f32 %v623_v15, %v620_v44  ;;  %v882_v54 = vpop.eup %881  ;;  %v674_v23 = vstv %s832_s20  ;;  %v678_v2 = vstv %s833_s21 }
  0xaa   :  { %889 = vrcp.f32 %v444_v40  ;;  %v884_v56 = vpop.eup %883  ;;  %v652_v63 = vadd.f32 %v651_v58, %v648_v25  ;;  %v655_v0 = vmul.f32 %v882_v54, %v654_v59 }
  0xab   :  { %v628_v57 = vadd.f32 %v627_v41, %v624_v50  ;;  %891 = vrcp.f32 %v492_v20  ;;  %v540_v62 = vadd.f32 1.0, %v884_v56 }
  0xac   :  { %v656_v7 = vadd.f32 %v655_v0, %v652_v63 }
  0xad   :  { %v632_v61 = vadd.f32 %v631_v52, %v628_v57 }
  0xae   :  { %v886_v3 = vpop.eup %885 }
  0xaf   :  { %v824_v45 = vmul.f32 -1.442695, %v632_v61  ;;  %v659_v8 = vmul.f32 %v886_v3, %v658_v4 }
  0xb1   :  { %893 = vpow2.f32 %v824_v45  ;;  %v660_v53 = vadd.f32 %v659_v8, %v656_v7 }
  0xb2   :  { %895 = vrcp.f32 %v540_v62 }
  0xb3   :  { %v888_v34 = vpop.eup %887 }
  0xb4   :  { %v890_v9 = vpop.eup %889  ;;  %v588_v10 = vadd.f32 1.0, %v888_v34 }
  0xb5   :  { %v663_v11 = vmul.f32 %v890_v9, %v662_v46  ;;  %v892_v12 = vpop.eup %891 }
  0xb6   :  { %897 = vrcp.f32 %v588_v10  ;;  %v667_v17 = vmul.f32 %v892_v12, %v666_v13 }
  0xb7   :  { %v664_v16 = vadd.f32 %v663_v11, %v660_v53 }
  0xb9   :  { %v668_v19 = vadd.f32 %v667_v17, %v664_v16 }
  0xbb   :  { %v894_v14 = vpop.eup %893 }
  0xbc   :  { %v896_v51 = vpop.eup %895  ;;  %v636_v55 = vadd.f32 1.0, %v894_v14 }
  0xbd   :  { %v671_v21 = vmul.f32 %v896_v51, %v670_v18 }
  0xbe   :  { %899 = vrcp.f32 %v636_v55 }
  0xbf   :  { %v672_v24 = vadd.f32 %v671_v21, %v668_v19 }
  0xc0   :  { %v898_v22 = vpop.eup %897 }
  0xc1   :  { %v675_v60 = vmul.f32 %v898_v22, %v674_v23 }
  0xc3   :  { %v676_v26 = vadd.f32 %v675_v60, %v672_v24 }
  0xc8   :  { %v900_v27 = vpop.eup %899 }
  0xc9   :  { %v679_v28 = vmul.f32 %v900_v27, %v678_v2 }
  0xcb   :  { %v680_v29 = vadd.f32 %v679_v28, %v676_v26 }
  0xcd   :  { %681 = vst [vmem:[%s1573_s7] sm:$0x1] %v680_v29 }
  0xce   :  { %686 = vsyncpa [#allocation4], 1 }
  0xcf   :  { %687 = vsyncpa [#allocation6], 1 }
  0xd0   :  { %688 = vsyncpa [#allocation9], 1 }

</bundles_post_ra>
